<compile_context>
chip_gen: v6e
topology: v6e:2x2x1
jax: 0.10.0
libtpu: 0.0.40
codegen_flags: <defaults>
</compile_context>

<pallas_src>
import math

import jax
import jax.numpy as jnp
from jax import lax
from jax.experimental import pallas as pl
from jax.experimental.pallas import tpu as pltpu

KSIZE = 5          # both convs are 5x5, stride 1, no padding
SUBLANE = 8
TILE_K = 22528     # fc1 contraction tile: 22528 x 240 x bf16 ~= 10.8 MiB per buffer


def _round_up(n, m):
    return (n + m - 1) // m * m


# ----------------------------------------------------------------------------
# Fused conv5x5 + bias + relu + maxpool(2,2).  One grid step = one image.
#   x_ref  : (H, Ci, W)           W in lanes (lane-dense), Ci padded to sublane mult.
#   w_ref  : (6, 2*Co, 5*Ci) bf16 slab[j] = [w_kh=j ; w_kh=j-1] (zeros at j=5 / j=0)
#   b_ref  : (Co, 1)              f32
#   sel_ref: (Wout, Wout)    bf16 [even | odd] 0/1 column-selection matrices
#   o_ref  : (Hp, Co, Wp)         f32
#   patch_ref (scratch): (6, 5*Ci, Wout) bf16 im2col ring, keyed by input row % 6.
# Per pooled row: the 2 new contributing input rows are turned into im2col patches
# (the other 4 are reused from the ring); each patch feeds ONE stacked matmul that
# produces both conv rows of the pair; 2x2 pooling = row max + one selection matmul.
# ----------------------------------------------------------------------------
def _conv_relu_pool_kernel(x_ref, w_ref, b_ref, sel_ref, o_ref, patch_ref):
    h_pool, c_out, w_pool = o_ref.shape
    w_in = x_ref.shape[2]
    w_out = w_in - KSIZE + 1
    n_slots = KSIZE + 1                                   # 6 contributing input rows

    bias = jnp.broadcast_to(b_ref[...], (c_out, w_pool))  # hoisted (no re-broadcast)

    def build_patch(row, slot):
        slab = x_ref[row]                                 # (Ci, W) f32
        patch = jnp.concatenate(                          # im2col: (5*Ci, Wout)
            [slab[:, kw:kw + w_out] for kw in range(KSIZE)], axis=0)
        patch_ref[slot] = patch.astype(jnp.bfloat16)      # bf16 MXU operand

    # Prologue: input rows 0..3 (shared with pooled row 0).
    for r0 in range(n_slots - 2):
        build_patch(r0, r0)

    @pl.loop(0, h_pool)
    def _(hp):
        r = 2 * hp
        # Only the two NEW input rows need lane realignment this step (ring reuse).
        build_patch(r + 4, (r + 4) % n_slots)
        build_patch(r + 5, (r + 5) % n_slots)

        acc = jnp.zeros((2 * c_out, w_out), jnp.float32)  # both conv rows of the pair
        for j in range(n_slots):                          # one matmul per input row
            acc = acc + jnp.dot(w_ref[j], patch_ref[(r + j) % n_slots],
                                preferred_element_type=jnp.float32)

        rowmax = jnp.maximum(acc[:c_out], acc[c_out:])    # pool the conv-row pair
        both = jnp.dot(rowmax.astype(jnp.bfloat16), sel_ref[...],
                       preferred_element_type=jnp.float32)        # (Co, 2*Wp)
        pooled = jnp.maximum(both[:, :w_pool], both[:, w_pool:])  # pool column pairs
        # bias is uniform over the window and relu is monotone -> add/relu after pool.
        o_ref[hp] = jnp.maximum(pooled + bias, 0.0).astype(o_ref.dtype)


def conv2d_relu_maxpool(x_hcw, w_stk, bias_col, sel):
    """x_hcw: (B,H,Ci,W) f32; w_stk: (6,2*Co,5*Ci) bf16; bias: (Co,1); sel: (Wout,Wout)."""
    B, H, Ci, W = x_hcw.shape
    Co = w_stk.shape[1] // 2
    Hout, Wout = H - KSIZE + 1, W - KSIZE + 1
    Hp, Wp = Hout // 2, Wout // 2
    return pl.pallas_call(
        _conv_relu_pool_kernel,
        out_shape=jax.ShapeDtypeStruct((B, Hp, Co, Wp), jnp.float32),
        grid_spec=pltpu.PrefetchScalarGridSpec(
            num_scalar_prefetch=0,
            grid=(B,),
            in_specs=[
                pl.BlockSpec((None, H, Ci, W), lambda b: (b, 0, 0, 0)),
                pl.BlockSpec((KSIZE + 1, 2 * Co, KSIZE * Ci), lambda b: (0, 0, 0)),
                pl.BlockSpec((Co, 1), lambda b: (0, 0)),
                pl.BlockSpec((Wout, Wout), lambda b: (0, 0)),
            ],
            out_specs=pl.BlockSpec((None, Hp, Co, Wp), lambda b: (b, 0, 0, 0)),
            scratch_shapes=[pltpu.VMEM((KSIZE + 1, KSIZE * Ci, Wout), jnp.bfloat16)],
        ),
        compiler_params=pltpu.CompilerParams(
            dimension_semantics=("parallel",)),           # one image per core on v7x
    )(x_hcw, w_stk, bias_col, sel)


# ----------------------------------------------------------------------------
# Fused fully-connected head: K-tiled fc1 (f32 accumulator resident across the K
# grid axis, bf16 weight stream) with fc1-relu + fc2 + relu + fc3 + log_softmax
# fused into the final K step.  Single kernel launch for the whole FC tail.
# TODO(synk): a v7x-only 2-TensorCore N-split of fc1 would need a cross-core
# reduction for fc2 and is left out.
# ----------------------------------------------------------------------------
def _fc_fused_kernel(x_ref, w1_ref, b1_ref, w2_ref, b2_ref, w3_ref, b3_ref,
                     o_ref, acc_ref):
    k = pl.program_id(0)

    @pl.when(k == 0)
    def _():
        acc_ref[...] = jnp.zeros_like(acc_ref)

    # bf16 x bf16 MXU matmul, f32 accumulation (weight stays bf16 -> no big upcast).
    acc_ref[...] += jnp.dot(x_ref[...].astype(jnp.bfloat16), w1_ref[...],
                            preferred_element_type=jnp.float32)

    @pl.when(k == pl.num_programs(0) - 1)
    def _():
        h = jnp.maximum(acc_ref[...] + b1_ref[...], 0.0)                    # fc1+relu
        h = jnp.maximum(jnp.dot(h, w2_ref[...],
                                preferred_element_type=jnp.float32)
                        + b2_ref[...], 0.0)                                 # fc2+relu
        logits = jnp.dot(h, w3_ref[...],
                         preferred_element_type=jnp.float32) + b3_ref[...]  # fc3
        m = jnp.max(logits, axis=-1, keepdims=True)
        lse = m + jnp.log(jnp.sum(jnp.exp(logits - m), axis=-1, keepdims=True))
        o_ref[...] = (logits - lse).astype(o_ref.dtype)


def fc_fused(x_pad, W1p, B1, W2, B2, W3, B3, tile_k):
    """x_pad: (B, Kpad) f32; W1p: (Kpad, 240) bf16 (pre-padded/permuted); W2/W3 f32."""
    Bm, Kp = x_pad.shape
    N1, N2, N3 = W1p.shape[1], W2.shape[1], W3.shape[1]
    grid_k = Kp // tile_k
    return pl.pallas_call(
        _fc_fused_kernel,
        out_shape=jax.ShapeDtypeStruct((Bm, N3), jnp.float32),
        grid_spec=pltpu.PrefetchScalarGridSpec(
            num_scalar_prefetch=0,
            grid=(grid_k,),
            in_specs=[
                pl.BlockSpec((Bm, tile_k), lambda k: (0, k)),
                pl.BlockSpec((tile_k, N1), lambda k: (k, 0)),
                pl.BlockSpec((1, N1), lambda k: (0, 0)),
                pl.BlockSpec((N1, N2), lambda k: (0, 0)),
                pl.BlockSpec((1, N2), lambda k: (0, 0)),
                pl.BlockSpec((N2, N3), lambda k: (0, 0)),
                pl.BlockSpec((1, N3), lambda k: (0, 0)),
            ],
            out_specs=pl.BlockSpec((Bm, N3), lambda k: (0, 0)),
            scratch_shapes=[pltpu.VMEM((Bm, N1), jnp.float32)],
        ),
        compiler_params=pltpu.CompilerParams(
            dimension_semantics=("arbitrary",),
            vmem_limit_bytes=40 * 1024 * 1024),   # 2 x 10.8 MiB bf16 W1 buffers + rest
    )(x_pad, W1p, B1, W2, B2, W3, B3)


# ----------------------------------------------------------------------------
# One-time parameter preparation (hoisted out of the per-forward path):
# stacked bf16 conv weight slabs, channel padding, fused bf16 pool selectors,
# and the single pad + row-permute + bf16 cast of the 86 MB fc1 weight.
# ----------------------------------------------------------------------------
def _conv_weight_stacked(w, ci_pad):
    Co, Ci = w.shape[0], w.shape[1]
    if ci_pad > Ci:
        w = jnp.pad(w, ((0, 0), (0, ci_pad - Ci), (0, 0), (0, 0)))
    # (Co, Ci, kh, kw) -> (kh, Co, kw, Ci) -> (kh, Co, kw*Ci + ci)
    wk = jnp.transpose(w, (2, 0, 3, 1)).reshape(KSIZE, Co, KSIZE * ci_pad)
    zeros = jnp.zeros((1, Co, KSIZE * ci_pad), wk.dtype)
    top = jnp.concatenate([wk, zeros], axis=0)     # slab j top    = w[kh=j]   (0 at j=5)
    bot = jnp.concatenate([zeros, wk], axis=0)     # slab j bottom = w[kh=j-1] (0 at j=0)
    return jnp.concatenate([top, bot], axis=1).astype(jnp.bfloat16)   # (6, 2*Co, 5*Ci)


def _pool_sel(w_out):
    wp = w_out // 2
    rows = jnp.arange(w_out)[:, None]
    cols = jnp.arange(wp)[None, :]
    even = (rows == 2 * cols).astype(jnp.float32)
    odd = (rows == 2 * cols + 1).astype(jnp.float32)
    return jnp.concatenate([even, odd], axis=1).astype(jnp.bfloat16)  # (Wout, 2*Wp)


def prepare_params(params, image_hw=(224, 224), tile_k=TILE_K):
    (w1, b1, w2, b2, W1, B1, W2, B2, W3, B3) = params
    H, W = image_hw
    ci1 = _round_up(w1.shape[1], SUBLANE)            # 3 -> 8 (sublane aligned)
    W1out = W - KSIZE + 1                            # 220
    Wp1 = W1out // 2                                 # 110
    W2out = Wp1 - KSIZE + 1                          # 106
    Wp2 = W2out // 2                                 # 53
    Hp1 = (H - KSIZE + 1) // 2                       # 110
    Hp2 = (Hp1 - KSIZE + 1) // 2                     # 53
    Co2 = w2.shape[0]                                # 32
    K = W1.shape[0]                                  # 89888
    k_pad = _round_up(K, tile_k)                     # 90112
    # Permute fc1 rows ONCE from torch's (C,H,W) flatten order to conv2's natural
    # (Hp,Co,Wp) output order (drops the activation transpose in cnn_forward).
    W1_hcw = W1.reshape(Co2, Hp2, Wp2, -1).transpose(1, 0, 2, 3).reshape(K, -1)
    return dict(
        ci1=ci1,
        w1k=_conv_weight_stacked(w1, ci1), b1=b1.reshape(-1, 1), sel1=_pool_sel(W1out),
        w2k=_conv_weight_stacked(w2, w2.shape[1]), b2=b2.reshape(-1, 1),
        sel2=_pool_sel(W2out),
        # pad + cast the 86 MB weight ONCE; bf16 halves the fc1 HBM stream
        W1p=jnp.pad(W1_hcw, ((0, k_pad - K), (0, 0))).astype(jnp.bfloat16),
        B1=B1.reshape(1, -1), W2=W2, B2=B2.reshape(1, -1),
        W3=W3, B3=B3.reshape(1, -1),
        k_pad=k_pad, tile_k=tile_k,
    )


# ----------------------------------------------------------------------------
# Full CNN forward (mirrors the PyTorch module).
# ----------------------------------------------------------------------------
def cnn_forward(x_nchw, prep):
    B, C = x_nchw.shape[0], x_nchw.shape[1]
    x = jnp.pad(x_nchw, ((0, 0), (0, prep["ci1"] - C), (0, 0), (0, 0)))
    x = jnp.transpose(x, (0, 2, 1, 3))                                  # (B,H,Ci,W)
    y = conv2d_relu_maxpool(x, prep["w1k"], prep["b1"], prep["sel1"])   # (B,110,16,110)
    y = conv2d_relu_maxpool(y, prep["w2k"], prep["b2"], prep["sel2"])   # (B,53,32,53)
    # W1 rows were pre-permuted to (Hp, Co, Wp) order -> flatten directly (no transpose).
    y = y.reshape(B, -1)
    y = jnp.pad(y, ((0, 0), (0, prep["k_pad"] - y.shape[1])))           # tiny activation pad
    return fc_fused(y, prep["W1p"], prep["B1"], prep["W2"], prep["B2"],
                    prep["W3"], prep["B3"], prep["tile_k"])


# ----------------------------------------------------------------------------
# Deterministic synthetic parameters (torch-like uniform(+-1/sqrt(fan_in))).
# Linear weights stored as (in_features, out_features).
# ----------------------------------------------------------------------------
def init_params(key):
    def uinit(k, shape, fan_in):
        bound = 1.0 / math.sqrt(fan_in)
        return jax.random.uniform(k, shape, jnp.float32, -bound, bound)

    ks = jax.random.split(key, 10)
    w1 = uinit(ks[0], (16, 3, 5, 5), 3 * 25);   b1 = uinit(ks[1], (16,), 3 * 25)
    w2 = uinit(ks[2], (32, 16, 5, 5), 16 * 25); b2 = uinit(ks[3], (32,), 16 * 25)
    W1 = uinit(ks[4], (53 * 53 * 32, 240), 53 * 53 * 32)
    B1 = uinit(ks[5], (240,), 53 * 53 * 32)
    W2 = uinit(ks[6], (240, 120), 240);         B2 = uinit(ks[7], (120,), 240)
    W3 = uinit(ks[8], (120, 42), 120);          B3 = uinit(ks[9], (42,), 120)
    return (w1, b1, w2, b2, W1, B1, W2, B2, W3, B3)


# Pure-JAX/XLA reference for correctness checking.
def reference_forward(x, params):
    (w1, b1, w2, b2, W1, B1, W2, B2, W3, B3) = params
    dn = ("NCHW", "OIHW", "NCHW")
    y = lax.conv_general_dilated(x, w1, (1, 1), "VALID", dimension_numbers=dn)
    y = jnp.maximum(y + b1[None, :, None, None], 0.0)
    y = lax.reduce_window(y, -jnp.inf, lax.max, (1, 1, 2, 2), (1, 1, 2, 2), "VALID")
    y = lax.conv_general_dilated(y, w2, (1, 1), "VALID", dimension_numbers=dn)
    y = jnp.maximum(y + b2[None, :, None, None], 0.0)
    y = lax.reduce_window(y, -jnp.inf, lax.max, (1, 1, 2, 2), (1, 1, 2, 2), "VALID")
    y = y.reshape(y.shape[0], -1)
    y = jnp.maximum(y @ W1 + B1, 0.0)
    y = jnp.maximum(y @ W2 + B2, 0.0)
    y = y @ W3 + B3
    return jax.nn.log_softmax(y, axis=1)


if __name__ == "__main__":
    key = jax.random.PRNGKey(0)
    kx, kp = jax.random.split(key)
    params = init_params(kp)
    prep = prepare_params(params)                      # one-time weight prep
    x = jax.random.normal(kx, (2, 3, 224, 224), jnp.float32)   # NCHW like PyTorch

    out = jax.block_until_ready(cnn_forward(x, prep))
    assert out.shape == (2, 42) and out.dtype == jnp.float32

    ref = jax.block_until_ready(reference_forward(x, params))
    max_err = float(jnp.max(jnp.abs(out - ref)))
    # bf16 MXU operands (f32 accumulation) vs. an f32 reference -> slightly looser tol.
    assert jnp.allclose(out, ref, atol=3e-3, rtol=3e-3), f"max_err={max_err}"

    print("KERNEL_OK")
</pallas_src>

<mosaic_0001>
module attributes {stable_mosaic.version = 11 : i64} {
  func.func @_conv_relu_pool_kernel(%arg0: i32, %arg1: memref<1x224x8x224xf32, #tpu.memory_space<vmem>>, %arg2: memref<6x32x40xbf16, #tpu.memory_space<vmem>>, %arg3: memref<16x1xf32, #tpu.memory_space<vmem>>, %arg4: memref<220x220xbf16, #tpu.memory_space<vmem>>, %arg5: memref<1x110x16x110xf32, #tpu.memory_space<vmem>>, %arg6: memref<6x40x220xbf16, #tpu.memory_space<vmem>>) attributes {dimension_semantics = [#tpu.dimension_semantics<parallel>], iteration_bounds = array<i64: 2>, scalar_prefetch = 0 : i64, scratch_operands = 1 : i64, tpu.core_type = #tpu.core_type<tc>, window_params = [{transform_indices = @transform_0, window_bounds = array<i64: 1, 224, 8, 224>}, {pipeline_mode = #tpu.pipeline_mode<synchronous>, transform_indices = @transform_1, window_bounds = array<i64: 6, 32, 40>}, {pipeline_mode = #tpu.pipeline_mode<synchronous>, transform_indices = @transform_2, window_bounds = array<i64: 16, 1>}, {pipeline_mode = #tpu.pipeline_mode<synchronous>, transform_indices = @transform_3, window_bounds = array<i64: 220, 220>}, {transform_indices = @transform_4, window_bounds = array<i64: 1, 110, 16, 110>}]} {
    %c0 = arith.constant 0 : index
    %c0_0 = arith.constant 0 : index
    %0 = vector.load %arg3[%c0, %c0_0] : memref<16x1xf32, #tpu.memory_space<vmem>>, vector<16x1xf32>
    %1 = vector.shape_cast %0 : vector<16x1xf32> to vector<16x1xf32>
    %2 = vector.broadcast %1 : vector<16x1xf32> to vector<16x110xf32>
    %c0_1 = arith.constant 0 : index
    %c0_2 = arith.constant 0 : index
    %c0_3 = arith.constant 0 : index
    %c0_4 = arith.constant 0 : index
    %3 = vector.load %arg1[%c0_1, %c0_2, %c0_3, %c0_4] : memref<1x224x8x224xf32, #tpu.memory_space<vmem>>, vector<1x1x8x224xf32>
    %4 = vector.shape_cast %3 : vector<1x1x8x224xf32> to vector<8x224xf32>
    %5 = vector.extract_strided_slice %4 {offsets = [0, 0], sizes = [8, 220], strides = [1, 1]} : vector<8x224xf32> to vector<8x220xf32>
    %6 = vector.extract_strided_slice %4 {offsets = [0, 1], sizes = [8, 220], strides = [1, 1]} : vector<8x224xf32> to vector<8x220xf32>
    %7 = vector.extract_strided_slice %4 {offsets = [0, 2], sizes = [8, 220], strides = [1, 1]} : vector<8x224xf32> to vector<8x220xf32>
    %8 = vector.extract_strided_slice %4 {offsets = [0, 3], sizes = [8, 220], strides = [1, 1]} : vector<8x224xf32> to vector<8x220xf32>
    %9 = vector.extract_strided_slice %4 {offsets = [0, 4], sizes = [8, 220], strides = [1, 1]} : vector<8x224xf32> to vector<8x220xf32>
    %10 = tpu.concatenate %5, %6, %7, %8, %9 in 0 : vector<8x220xf32>, vector<8x220xf32>, vector<8x220xf32>, vector<8x220xf32>, vector<8x220xf32> -> vector<40x220xf32>
    %11 = arith.truncf %10 : vector<40x220xf32> to vector<40x220xbf16>
    %c0_5 = arith.constant 0 : index
    %c0_6 = arith.constant 0 : index
    %c0_7 = arith.constant 0 : index
    %12 = vector.load %arg6[%c0_5, %c0_6, %c0_7] : memref<6x40x220xbf16, #tpu.memory_space<vmem>>, vector<1x40x220xbf16>
    %13 = vector.shape_cast %12 : vector<1x40x220xbf16> to vector<40x220xbf16>
    %14 = vector.shape_cast %11 : vector<40x220xbf16> to vector<1x40x220xbf16>
    tpu.vector_store %arg6[%c0_5, %c0_6, %c0_7], %14 {strides = array<i32>} : memref<6x40x220xbf16, #tpu.memory_space<vmem>>, vector<1x40x220xbf16>,
    %c0_8 = arith.constant 0 : index
    %c1 = arith.constant 1 : index
    %c0_9 = arith.constant 0 : index
    %c0_10 = arith.constant 0 : index
    %15 = vector.load %arg1[%c0_8, %c1, %c0_9, %c0_10] : memref<1x224x8x224xf32, #tpu.memory_space<vmem>>, vector<1x1x8x224xf32>
    %16 = vector.shape_cast %15 : vector<1x1x8x224xf32> to vector<8x224xf32>
    %17 = vector.extract_strided_slice %16 {offsets = [0, 0], sizes = [8, 220], strides = [1, 1]} : vector<8x224xf32> to vector<8x220xf32>
    %18 = vector.extract_strided_slice %16 {offsets = [0, 1], sizes = [8, 220], strides = [1, 1]} : vector<8x224xf32> to vector<8x220xf32>
    %19 = vector.extract_strided_slice %16 {offsets = [0, 2], sizes = [8, 220], strides = [1, 1]} : vector<8x224xf32> to vector<8x220xf32>
    %20 = vector.extract_strided_slice %16 {offsets = [0, 3], sizes = [8, 220], strides = [1, 1]} : vector<8x224xf32> to vector<8x220xf32>
    %21 = vector.extract_strided_slice %16 {offsets = [0, 4], sizes = [8, 220], strides = [1, 1]} : vector<8x224xf32> to vector<8x220xf32>
    %22 = tpu.concatenate %17, %18, %19, %20, %21 in 0 : vector<8x220xf32>, vector<8x220xf32>, vector<8x220xf32>, vector<8x220xf32>, vector<8x220xf32> -> vector<40x220xf32>
    %23 = arith.truncf %22 : vector<40x220xf32> to vector<40x220xbf16>
    %c1_11 = arith.constant 1 : index
    %c0_12 = arith.constant 0 : index
    %c0_13 = arith.constant 0 : index
    %24 = vector.load %arg6[%c1_11, %c0_12, %c0_13] : memref<6x40x220xbf16, #tpu.memory_space<vmem>>, vector<1x40x220xbf16>
    %25 = vector.shape_cast %24 : vector<1x40x220xbf16> to vector<40x220xbf16>
    %26 = vector.shape_cast %23 : vector<40x220xbf16> to vector<1x40x220xbf16>
    tpu.vector_store %arg6[%c1_11, %c0_12, %c0_13], %26 {strides = array<i32>} : memref<6x40x220xbf16, #tpu.memory_space<vmem>>, vector<1x40x220xbf16>,
    %c0_14 = arith.constant 0 : index
    %c2 = arith.constant 2 : index
    %c0_15 = arith.constant 0 : index
    %c0_16 = arith.constant 0 : index
    %27 = vector.load %arg1[%c0_14, %c2, %c0_15, %c0_16] : memref<1x224x8x224xf32, #tpu.memory_space<vmem>>, vector<1x1x8x224xf32>
    %28 = vector.shape_cast %27 : vector<1x1x8x224xf32> to vector<8x224xf32>
    %29 = vector.extract_strided_slice %28 {offsets = [0, 0], sizes = [8, 220], strides = [1, 1]} : vector<8x224xf32> to vector<8x220xf32>
    %30 = vector.extract_strided_slice %28 {offsets = [0, 1], sizes = [8, 220], strides = [1, 1]} : vector<8x224xf32> to vector<8x220xf32>
    %31 = vector.extract_strided_slice %28 {offsets = [0, 2], sizes = [8, 220], strides = [1, 1]} : vector<8x224xf32> to vector<8x220xf32>
    %32 = vector.extract_strided_slice %28 {offsets = [0, 3], sizes = [8, 220], strides = [1, 1]} : vector<8x224xf32> to vector<8x220xf32>
    %33 = vector.extract_strided_slice %28 {offsets = [0, 4], sizes = [8, 220], strides = [1, 1]} : vector<8x224xf32> to vector<8x220xf32>
    %34 = tpu.concatenate %29, %30, %31, %32, %33 in 0 : vector<8x220xf32>, vector<8x220xf32>, vector<8x220xf32>, vector<8x220xf32>, vector<8x220xf32> -> vector<40x220xf32>
    %35 = arith.truncf %34 : vector<40x220xf32> to vector<40x220xbf16>
    %c2_17 = arith.constant 2 : index
    %c0_18 = arith.constant 0 : index
    %c0_19 = arith.constant 0 : index
    %36 = vector.load %arg6[%c2_17, %c0_18, %c0_19] : memref<6x40x220xbf16, #tpu.memory_space<vmem>>, vector<1x40x220xbf16>
    %37 = vector.shape_cast %36 : vector<1x40x220xbf16> to vector<40x220xbf16>
    %38 = vector.shape_cast %35 : vector<40x220xbf16> to vector<1x40x220xbf16>
    tpu.vector_store %arg6[%c2_17, %c0_18, %c0_19], %38 {strides = array<i32>} : memref<6x40x220xbf16, #tpu.memory_space<vmem>>, vector<1x40x220xbf16>,
    %c0_20 = arith.constant 0 : index
    %c3 = arith.constant 3 : index
    %c0_21 = arith.constant 0 : index
    %c0_22 = arith.constant 0 : index
    %39 = vector.load %arg1[%c0_20, %c3, %c0_21, %c0_22] : memref<1x224x8x224xf32, #tpu.memory_space<vmem>>, vector<1x1x8x224xf32>
    %40 = vector.shape_cast %39 : vector<1x1x8x224xf32> to vector<8x224xf32>
    %41 = vector.extract_strided_slice %40 {offsets = [0, 0], sizes = [8, 220], strides = [1, 1]} : vector<8x224xf32> to vector<8x220xf32>
    %42 = vector.extract_strided_slice %40 {offsets = [0, 1], sizes = [8, 220], strides = [1, 1]} : vector<8x224xf32> to vector<8x220xf32>
    %43 = vector.extract_strided_slice %40 {offsets = [0, 2], sizes = [8, 220], strides = [1, 1]} : vector<8x224xf32> to vector<8x220xf32>
    %44 = vector.extract_strided_slice %40 {offsets = [0, 3], sizes = [8, 220], strides = [1, 1]} : vector<8x224xf32> to vector<8x220xf32>
    %45 = vector.extract_strided_slice %40 {offsets = [0, 4], sizes = [8, 220], strides = [1, 1]} : vector<8x224xf32> to vector<8x220xf32>
    %46 = tpu.concatenate %41, %42, %43, %44, %45 in 0 : vector<8x220xf32>, vector<8x220xf32>, vector<8x220xf32>, vector<8x220xf32>, vector<8x220xf32> -> vector<40x220xf32>
    %47 = arith.truncf %46 : vector<40x220xf32> to vector<40x220xbf16>
    %c3_23 = arith.constant 3 : index
    %c0_24 = arith.constant 0 : index
    %c0_25 = arith.constant 0 : index
    %48 = vector.load %arg6[%c3_23, %c0_24, %c0_25] : memref<6x40x220xbf16, #tpu.memory_space<vmem>>, vector<1x40x220xbf16>
    %49 = vector.shape_cast %48 : vector<1x40x220xbf16> to vector<40x220xbf16>
    %50 = vector.shape_cast %47 : vector<40x220xbf16> to vector<1x40x220xbf16>
    tpu.vector_store %arg6[%c3_23, %c0_24, %c0_25], %50 {strides = array<i32>} : memref<6x40x220xbf16, #tpu.memory_space<vmem>>, vector<1x40x220xbf16>,
    %c0_i32 = arith.constant 0 : i32
    %c110_i32 = arith.constant 110 : i32
    %51 = arith.addi %c0_i32, %c110_i32 : i32
    %c1_i32 = arith.constant 1 : i32
    scf.for %arg7 = %c0_i32 to %51 step %c1_i32  : i32 {
      %c1_i32_27 = arith.constant 1 : i32
      %52 = arith.muli %arg7, %c1_i32_27 : i32
      %c0_i32_28 = arith.constant 0 : i32
      %53 = arith.addi %c0_i32_28, %52 : i32
      %c2_i32 = arith.constant 2 : i32
      %54 = arith.muli %c2_i32, %53 : i32
      %c4_i32 = arith.constant 4 : i32
      %55 = arith.addi %54, %c4_i32 : i32
      %c4_i32_29 = arith.constant 4 : i32
      %56 = arith.addi %54, %c4_i32_29 : i32
      %c6_i32 = arith.constant 6 : i32
      %c0_i32_30 = arith.constant 0 : i32
      %57 = arith.cmpi eq, %c6_i32, %c0_i32_30 : i32
      %c1_i32_31 = arith.constant 1 : i32
      %58 = arith.select %57, %c1_i32_31, %c6_i32 : i32
      %59 = arith.remsi %56, %58 : i32
      %c0_i32_32 = arith.constant 0 : i32
      %60 = arith.cmpi ne, %59, %c0_i32_32 : i32
      %c0_i32_33 = arith.constant 0 : i32
      %61 = arith.cmpi slt, %59, %c0_i32_33 : i32
      %c0_i32_34 = arith.constant 0 : i32
      %62 = arith.cmpi slt, %58, %c0_i32_34 : i32
      %63 = arith.xori %61, %62 : i1
      %64 = arith.andi %63, %60 : i1
      %65 = arith.addi %59, %58 : i32
      %66 = arith.select %64, %65, %59 : i32
      %c0_35 = arith.constant 0 : index
      %67 = arith.index_cast %55 : i32 to index
      %c0_36 = arith.constant 0 : index
      %c0_37 = arith.constant 0 : index
      %68 = vector.load %arg1[%c0_35, %67, %c0_36, %c0_37] : memref<1x224x8x224xf32, #tpu.memory_space<vmem>>, vector<1x1x8x224xf32>
      %69 = vector.shape_cast %68 : vector<1x1x8x224xf32> to vector<8x224xf32>
      %70 = vector.extract_strided_slice %69 {offsets = [0, 0], sizes = [8, 220], strides = [1, 1]} : vector<8x224xf32> to vector<8x220xf32>
      %71 = vector.extract_strided_slice %69 {offsets = [0, 1], sizes = [8, 220], strides = [1, 1]} : vector<8x224xf32> to vector<8x220xf32>
      %72 = vector.extract_strided_slice %69 {offsets = [0, 2], sizes = [8, 220], strides = [1, 1]} : vector<8x224xf32> to vector<8x220xf32>
      %73 = vector.extract_strided_slice %69 {offsets = [0, 3], sizes = [8, 220], strides = [1, 1]} : vector<8x224xf32> to vector<8x220xf32>
      %74 = vector.extract_strided_slice %69 {offsets = [0, 4], sizes = [8, 220], strides = [1, 1]} : vector<8x224xf32> to vector<8x220xf32>
      %75 = tpu.concatenate %70, %71, %72, %73, %74 in 0 : vector<8x220xf32>, vector<8x220xf32>, vector<8x220xf32>, vector<8x220xf32>, vector<8x220xf32> -> vector<40x220xf32>
      %76 = arith.truncf %75 : vector<40x220xf32> to vector<40x220xbf16>
      %77 = arith.index_cast %66 : i32 to index
      %c0_38 = arith.constant 0 : index
      %c0_39 = arith.constant 0 : index
      %78 = vector.load %arg6[%77, %c0_38, %c0_39] : memref<6x40x220xbf16, #tpu.memory_space<vmem>>, vector<1x40x220xbf16>
      %79 = vector.shape_cast %78 : vector<1x40x220xbf16> to vector<40x220xbf16>
      %80 = vector.shape_cast %76 : vector<40x220xbf16> to vector<1x40x220xbf16>
      tpu.vector_store %arg6[%77, %c0_38, %c0_39], %80 {strides = array<i32>} : memref<6x40x220xbf16, #tpu.memory_space<vmem>>, vector<1x40x220xbf16>,
      %c5_i32 = arith.constant 5 : i32
      %81 = arith.addi %54, %c5_i32 : i32
      %c5_i32_40 = arith.constant 5 : i32
      %82 = arith.addi %54, %c5_i32_40 : i32
      %c6_i32_41 = arith.constant 6 : i32
      %c0_i32_42 = arith.constant 0 : i32
      %83 = arith.cmpi eq, %c6_i32_41, %c0_i32_42 : i32
      %c1_i32_43 = arith.constant 1 : i32
      %84 = arith.select %83, %c1_i32_43, %c6_i32_41 : i32
      %85 = arith.remsi %82, %84 : i32
      %c0_i32_44 = arith.constant 0 : i32
      %86 = arith.cmpi ne, %85, %c0_i32_44 : i32
      %c0_i32_45 = arith.constant 0 : i32
      %87 = arith.cmpi slt, %85, %c0_i32_45 : i32
      %c0_i32_46 = arith.constant 0 : i32
      %88 = arith.cmpi slt, %84, %c0_i32_46 : i32
      %89 = arith.xori %87, %88 : i1
      %90 = arith.andi %89, %86 : i1
      %91 = arith.addi %85, %84 : i32
      %92 = arith.select %90, %91, %85 : i32
      %c0_47 = arith.constant 0 : index
      %93 = arith.index_cast %81 : i32 to index
      %c0_48 = arith.constant 0 : index
      %c0_49 = arith.constant 0 : index
      %94 = vector.load %arg1[%c0_47, %93, %c0_48, %c0_49] : memref<1x224x8x224xf32, #tpu.memory_space<vmem>>, vector<1x1x8x224xf32>
      %95 = vector.shape_cast %94 : vector<1x1x8x224xf32> to vector<8x224xf32>
      %96 = vector.extract_strided_slice %95 {offsets = [0, 0], sizes = [8, 220], strides = [1, 1]} : vector<8x224xf32> to vector<8x220xf32>
      %97 = vector.extract_strided_slice %95 {offsets = [0, 1], sizes = [8, 220], strides = [1, 1]} : vector<8x224xf32> to vector<8x220xf32>
      %98 = vector.extract_strided_slice %95 {offsets = [0, 2], sizes = [8, 220], strides = [1, 1]} : vector<8x224xf32> to vector<8x220xf32>
      %99 = vector.extract_strided_slice %95 {offsets = [0, 3], sizes = [8, 220], strides = [1, 1]} : vector<8x224xf32> to vector<8x220xf32>
      %100 = vector.extract_strided_slice %95 {offsets = [0, 4], sizes = [8, 220], strides = [1, 1]} : vector<8x224xf32> to vector<8x220xf32>
      %101 = tpu.concatenate %96, %97, %98, %99, %100 in 0 : vector<8x220xf32>, vector<8x220xf32>, vector<8x220xf32>, vector<8x220xf32>, vector<8x220xf32> -> vector<40x220xf32>
      %102 = arith.truncf %101 : vector<40x220xf32> to vector<40x220xbf16>
      %103 = arith.index_cast %92 : i32 to index
      %c0_50 = arith.constant 0 : index
      %c0_51 = arith.constant 0 : index
      %104 = vector.load %arg6[%103, %c0_50, %c0_51] : memref<6x40x220xbf16, #tpu.memory_space<vmem>>, vector<1x40x220xbf16>
      %105 = vector.shape_cast %104 : vector<1x40x220xbf16> to vector<40x220xbf16>
      %106 = vector.shape_cast %102 : vector<40x220xbf16> to vector<1x40x220xbf16>
      tpu.vector_store %arg6[%103, %c0_50, %c0_51], %106 {strides = array<i32>} : memref<6x40x220xbf16, #tpu.memory_space<vmem>>, vector<1x40x220xbf16>,
      %cst = arith.constant 0.000000e+00 : f32
      %107 = vector.broadcast %cst : f32 to vector<32x220xf32>
      %c0_52 = arith.constant 0 : index
      %c0_53 = arith.constant 0 : index
      %c0_54 = arith.constant 0 : index
      %108 = vector.load %arg2[%c0_52, %c0_53, %c0_54] : memref<6x32x40xbf16, #tpu.memory_space<vmem>>, vector<1x32x40xbf16>
      %109 = vector.shape_cast %108 : vector<1x32x40xbf16> to vector<32x40xbf16>
      %c0_i32_55 = arith.constant 0 : i32
      %110 = arith.addi %54, %c0_i32_55 : i32
      %c6_i32_56 = arith.constant 6 : i32
      %c0_i32_57 = arith.constant 0 : i32
      %111 = arith.cmpi eq, %c6_i32_56, %c0_i32_57 : i32
      %c1_i32_58 = arith.constant 1 : i32
      %112 = arith.select %111, %c1_i32_58, %c6_i32_56 : i32
      %113 = arith.remsi %110, %112 : i32
      %c0_i32_59 = arith.constant 0 : i32
      %114 = arith.cmpi ne, %113, %c0_i32_59 : i32
      %c0_i32_60 = arith.constant 0 : i32
      %115 = arith.cmpi slt, %113, %c0_i32_60 : i32
      %c0_i32_61 = arith.constant 0 : i32
      %116 = arith.cmpi slt, %112, %c0_i32_61 : i32
      %117 = arith.xori %115, %116 : i1
      %118 = arith.andi %117, %114 : i1
      %119 = arith.addi %113, %112 : i32
      %120 = arith.select %118, %119, %113 : i32
      %121 = arith.index_cast %120 : i32 to index
      %c0_62 = arith.constant 0 : index
      %c0_63 = arith.constant 0 : index
      %122 = vector.load %arg6[%121, %c0_62, %c0_63] : memref<6x40x220xbf16, #tpu.memory_space<vmem>>, vector<1x40x220xbf16>
      %123 = vector.shape_cast %122 : vector<1x40x220xbf16> to vector<40x220xbf16>
      %cst_64 = arith.constant dense<0.000000e+00> : vector<32x220xf32>
      %124 = tpu.matmul %109, %123, %cst_64 {dimension_numbers = #tpu.dot_dimension_numbers<[1], [0], [0], [1], [0, 0, 1, 1], [], []>} : vector<32x40xbf16>, vector<40x220xbf16>, vector<32x220xf32> -> vector<32x220xf32>
      %125 = arith.addf %107, %124 : vector<32x220xf32>
      %c1_65 = arith.constant 1 : index
      %c0_66 = arith.constant 0 : index
      %c0_67 = arith.constant 0 : index
      %126 = vector.load %arg2[%c1_65, %c0_66, %c0_67] : memref<6x32x40xbf16, #tpu.memory_space<vmem>>, vector<1x32x40xbf16>
      %127 = vector.shape_cast %126 : vector<1x32x40xbf16> to vector<32x40xbf16>
      %c1_i32_68 = arith.constant 1 : i32
      %128 = arith.addi %54, %c1_i32_68 : i32
      %c6_i32_69 = arith.constant 6 : i32
      %c0_i32_70 = arith.constant 0 : i32
      %129 = arith.cmpi eq, %c6_i32_69, %c0_i32_70 : i32
      %c1_i32_71 = arith.constant 1 : i32
      %130 = arith.select %129, %c1_i32_71, %c6_i32_69 : i32
      %131 = arith.remsi %128, %130 : i32
      %c0_i32_72 = arith.constant 0 : i32
      %132 = arith.cmpi ne, %131, %c0_i32_72 : i32
      %c0_i32_73 = arith.constant 0 : i32
      %133 = arith.cmpi slt, %131, %c0_i32_73 : i32
      %c0_i32_74 = arith.constant 0 : i32
      %134 = arith.cmpi slt, %130, %c0_i32_74 : i32
      %135 = arith.xori %133, %134 : i1
      %136 = arith.andi %135, %132 : i1
      %137 = arith.addi %131, %130 : i32
      %138 = arith.select %136, %137, %131 : i32
      %139 = arith.index_cast %138 : i32 to index
      %c0_75 = arith.constant 0 : index
      %c0_76 = arith.constant 0 : index
      %140 = vector.load %arg6[%139, %c0_75, %c0_76] : memref<6x40x220xbf16, #tpu.memory_space<vmem>>, vector<1x40x220xbf16>
      %141 = vector.shape_cast %140 : vector<1x40x220xbf16> to vector<40x220xbf16>
      %cst_77 = arith.constant dense<0.000000e+00> : vector<32x220xf32>
      %142 = tpu.matmul %127, %141, %cst_77 {dimension_numbers = #tpu.dot_dimension_numbers<[1], [0], [0], [1], [0, 0, 1, 1], [], []>} : vector<32x40xbf16>, vector<40x220xbf16>, vector<32x220xf32> -> vector<32x220xf32>
      %143 = arith.addf %125, %142 : vector<32x220xf32>
      %c2_78 = arith.constant 2 : index
      %c0_79 = arith.constant 0 : index
      %c0_80 = arith.constant 0 : index
      %144 = vector.load %arg2[%c2_78, %c0_79, %c0_80] : memref<6x32x40xbf16, #tpu.memory_space<vmem>>, vector<1x32x40xbf16>
      %145 = vector.shape_cast %144 : vector<1x32x40xbf16> to vector<32x40xbf16>
      %c2_i32_81 = arith.constant 2 : i32
      %146 = arith.addi %54, %c2_i32_81 : i32
      %c6_i32_82 = arith.constant 6 : i32
      %c0_i32_83 = arith.constant 0 : i32
      %147 = arith.cmpi eq, %c6_i32_82, %c0_i32_83 : i32
      %c1_i32_84 = arith.constant 1 : i32
      %148 = arith.select %147, %c1_i32_84, %c6_i32_82 : i32
      %149 = arith.remsi %146, %148 : i32
      %c0_i32_85 = arith.constant 0 : i32
      %150 = arith.cmpi ne, %149, %c0_i32_85 : i32
      %c0_i32_86 = arith.constant 0 : i32
      %151 = arith.cmpi slt, %149, %c0_i32_86 : i32
      %c0_i32_87 = arith.constant 0 : i32
      %152 = arith.cmpi slt, %148, %c0_i32_87 : i32
      %153 = arith.xori %151, %152 : i1
      %154 = arith.andi %153, %150 : i1
      %155 = arith.addi %149, %148 : i32
      %156 = arith.select %154, %155, %149 : i32
      %157 = arith.index_cast %156 : i32 to index
      %c0_88 = arith.constant 0 : index
      %c0_89 = arith.constant 0 : index
      %158 = vector.load %arg6[%157, %c0_88, %c0_89] : memref<6x40x220xbf16, #tpu.memory_space<vmem>>, vector<1x40x220xbf16>
      %159 = vector.shape_cast %158 : vector<1x40x220xbf16> to vector<40x220xbf16>
      %cst_90 = arith.constant dense<0.000000e+00> : vector<32x220xf32>
      %160 = tpu.matmul %145, %159, %cst_90 {dimension_numbers = #tpu.dot_dimension_numbers<[1], [0], [0], [1], [0, 0, 1, 1], [], []>} : vector<32x40xbf16>, vector<40x220xbf16>, vector<32x220xf32> -> vector<32x220xf32>
      %161 = arith.addf %143, %160 : vector<32x220xf32>
      %c3_91 = arith.constant 3 : index
      %c0_92 = arith.constant 0 : index
      %c0_93 = arith.constant 0 : index
      %162 = vector.load %arg2[%c3_91, %c0_92, %c0_93] : memref<6x32x40xbf16, #tpu.memory_space<vmem>>, vector<1x32x40xbf16>
      %163 = vector.shape_cast %162 : vector<1x32x40xbf16> to vector<32x40xbf16>
      %c3_i32 = arith.constant 3 : i32
      %164 = arith.addi %54, %c3_i32 : i32
      %c6_i32_94 = arith.constant 6 : i32
      %c0_i32_95 = arith.constant 0 : i32
      %165 = arith.cmpi eq, %c6_i32_94, %c0_i32_95 : i32
      %c1_i32_96 = arith.constant 1 : i32
      %166 = arith.select %165, %c1_i32_96, %c6_i32_94 : i32
      %167 = arith.remsi %164, %166 : i32
      %c0_i32_97 = arith.constant 0 : i32
      %168 = arith.cmpi ne, %167, %c0_i32_97 : i32
      %c0_i32_98 = arith.constant 0 : i32
      %169 = arith.cmpi slt, %167, %c0_i32_98 : i32
      %c0_i32_99 = arith.constant 0 : i32
      %170 = arith.cmpi slt, %166, %c0_i32_99 : i32
      %171 = arith.xori %169, %170 : i1
      %172 = arith.andi %171, %168 : i1
      %173 = arith.addi %167, %166 : i32
      %174 = arith.select %172, %173, %167 : i32
      %175 = arith.index_cast %174 : i32 to index
      %c0_100 = arith.constant 0 : index
      %c0_101 = arith.constant 0 : index
      %176 = vector.load %arg6[%175, %c0_100, %c0_101] : memref<6x40x220xbf16, #tpu.memory_space<vmem>>, vector<1x40x220xbf16>
      %177 = vector.shape_cast %176 : vector<1x40x220xbf16> to vector<40x220xbf16>
      %cst_102 = arith.constant dense<0.000000e+00> : vector<32x220xf32>
      %178 = tpu.matmul %163, %177, %cst_102 {dimension_numbers = #tpu.dot_dimension_numbers<[1], [0], [0], [1], [0, 0, 1, 1], [], []>} : vector<32x40xbf16>, vector<40x220xbf16>, vector<32x220xf32> -> vector<32x220xf32>
      %179 = arith.addf %161, %178 : vector<32x220xf32>
      %c4 = arith.constant 4 : index
      %c0_103 = arith.constant 0 : index
      %c0_104 = arith.constant 0 : index
      %180 = vector.load %arg2[%c4, %c0_103, %c0_104] : memref<6x32x40xbf16, #tpu.memory_space<vmem>>, vector<1x32x40xbf16>
      %181 = vector.shape_cast %180 : vector<1x32x40xbf16> to vector<32x40xbf16>
      %c4_i32_105 = arith.constant 4 : i32
      %182 = arith.addi %54, %c4_i32_105 : i32
      %c6_i32_106 = arith.constant 6 : i32
      %c0_i32_107 = arith.constant 0 : i32
      %183 = arith.cmpi eq, %c6_i32_106, %c0_i32_107 : i32
      %c1_i32_108 = arith.constant 1 : i32
      %184 = arith.select %183, %c1_i32_108, %c6_i32_106 : i32
      %185 = arith.remsi %182, %184 : i32
      %c0_i32_109 = arith.constant 0 : i32
      %186 = arith.cmpi ne, %185, %c0_i32_109 : i32
      %c0_i32_110 = arith.constant 0 : i32
      %187 = arith.cmpi slt, %185, %c0_i32_110 : i32
      %c0_i32_111 = arith.constant 0 : i32
      %188 = arith.cmpi slt, %184, %c0_i32_111 : i32
      %189 = arith.xori %187, %188 : i1
      %190 = arith.andi %189, %186 : i1
      %191 = arith.addi %185, %184 : i32
      %192 = arith.select %190, %191, %185 : i32
      %193 = arith.index_cast %192 : i32 to index
      %c0_112 = arith.constant 0 : index
      %c0_113 = arith.constant 0 : index
      %194 = vector.load %arg6[%193, %c0_112, %c0_113] : memref<6x40x220xbf16, #tpu.memory_space<vmem>>, vector<1x40x220xbf16>
      %195 = vector.shape_cast %194 : vector<1x40x220xbf16> to vector<40x220xbf16>
      %cst_114 = arith.constant dense<0.000000e+00> : vector<32x220xf32>
      %196 = tpu.matmul %181, %195, %cst_114 {dimension_numbers = #tpu.dot_dimension_numbers<[1], [0], [0], [1], [0, 0, 1, 1], [], []>} : vector<32x40xbf16>, vector<40x220xbf16>, vector<32x220xf32> -> vector<32x220xf32>
      %197 = arith.addf %179, %196 : vector<32x220xf32>
      %c5 = arith.constant 5 : index
      %c0_115 = arith.constant 0 : index
      %c0_116 = arith.constant 0 : index
      %198 = vector.load %arg2[%c5, %c0_115, %c0_116] : memref<6x32x40xbf16, #tpu.memory_space<vmem>>, vector<1x32x40xbf16>
      %199 = vector.shape_cast %198 : vector<1x32x40xbf16> to vector<32x40xbf16>
      %c5_i32_117 = arith.constant 5 : i32
      %200 = arith.addi %54, %c5_i32_117 : i32
      %c6_i32_118 = arith.constant 6 : i32
      %c0_i32_119 = arith.constant 0 : i32
      %201 = arith.cmpi eq, %c6_i32_118, %c0_i32_119 : i32
      %c1_i32_120 = arith.constant 1 : i32
      %202 = arith.select %201, %c1_i32_120, %c6_i32_118 : i32
      %203 = arith.remsi %200, %202 : i32
      %c0_i32_121 = arith.constant 0 : i32
      %204 = arith.cmpi ne, %203, %c0_i32_121 : i32
      %c0_i32_122 = arith.constant 0 : i32
      %205 = arith.cmpi slt, %203, %c0_i32_122 : i32
      %c0_i32_123 = arith.constant 0 : i32
      %206 = arith.cmpi slt, %202, %c0_i32_123 : i32
      %207 = arith.xori %205, %206 : i1
      %208 = arith.andi %207, %204 : i1
      %209 = arith.addi %203, %202 : i32
      %210 = arith.select %208, %209, %203 : i32
      %211 = arith.index_cast %210 : i32 to index
      %c0_124 = arith.constant 0 : index
      %c0_125 = arith.constant 0 : index
      %212 = vector.load %arg6[%211, %c0_124, %c0_125] : memref<6x40x220xbf16, #tpu.memory_space<vmem>>, vector<1x40x220xbf16>
      %213 = vector.shape_cast %212 : vector<1x40x220xbf16> to vector<40x220xbf16>
      %cst_126 = arith.constant dense<0.000000e+00> : vector<32x220xf32>
      %214 = tpu.matmul %199, %213, %cst_126 {dimension_numbers = #tpu.dot_dimension_numbers<[1], [0], [0], [1], [0, 0, 1, 1], [], []>} : vector<32x40xbf16>, vector<40x220xbf16>, vector<32x220xf32> -> vector<32x220xf32>
      %215 = arith.addf %197, %214 : vector<32x220xf32>
      %216 = vector.extract_strided_slice %215 {offsets = [0, 0], sizes = [16, 220], strides = [1, 1]} : vector<32x220xf32> to vector<16x220xf32>
      %217 = vector.extract_strided_slice %215 {offsets = [16, 0], sizes = [16, 220], strides = [1, 1]} : vector<32x220xf32> to vector<16x220xf32>
      %218 = arith.maximumf %216, %217 : vector<16x220xf32>
      %219 = arith.truncf %218 : vector<16x220xf32> to vector<16x220xbf16>
      %c0_127 = arith.constant 0 : index
      %c0_128 = arith.constant 0 : index
      %220 = vector.load %arg4[%c0_127, %c0_128] : memref<220x220xbf16, #tpu.memory_space<vmem>>, vector<220x220xbf16>
      %cst_129 = arith.constant dense<0.000000e+00> : vector<16x220xf32>
      %221 = tpu.matmul %219, %220, %cst_129 {dimension_numbers = #tpu.dot_dimension_numbers<[1], [0], [0], [1], [0, 0, 1, 1], [], []>} : vector<16x220xbf16>, vector<220x220xbf16>, vector<16x220xf32> -> vector<16x220xf32>
      %222 = vector.extract_strided_slice %221 {offsets = [0, 0], sizes = [16, 110], strides = [1, 1]} : vector<16x220xf32> to vector<16x110xf32>
      %223 = vector.extract_strided_slice %221 {offsets = [0, 110], sizes = [16, 110], strides = [1, 1]} : vector<16x220xf32> to vector<16x110xf32>
      %224 = arith.maximumf %222, %223 : vector<16x110xf32>
      %225 = arith.addf %224, %2 : vector<16x110xf32>
      %cst_130 = arith.constant 0.000000e+00 : f32
      %226 = vector.broadcast %cst_130 : f32 to vector<16x110xf32>
      %227 = arith.maximumf %225, %226 : vector<16x110xf32>
      %c0_131 = arith.constant 0 : index
      %228 = arith.index_cast %53 : i32 to index
      %c0_132 = arith.constant 0 : index
      %c0_133 = arith.constant 0 : index
      %229 = vector.load %arg5[%c0_131, %228, %c0_132, %c0_133] : memref<1x110x16x110xf32, #tpu.memory_space<vmem>>, vector<1x1x16x110xf32>
      %230 = vector.shape_cast %229 : vector<1x1x16x110xf32> to vector<16x110xf32>
      %231 = vector.shape_cast %227 : vector<16x110xf32> to vector<1x1x16x110xf32>
      tpu.vector_store %arg5[%c0_131, %228, %c0_132, %c0_133], %231 {strides = array<i32>} : memref<1x110x16x110xf32, #tpu.memory_space<vmem>>, vector<1x1x16x110xf32>,
    }
    %c110_i32_26 = arith.constant 110 : i32
    return
  }
  func.func @transform_0(%arg0: i32) -> (i32, i32, i32, i32) {
    %c0_i32 = arith.constant 0 : i32
    %c0_i32_0 = arith.constant 0 : i32
    %c0_i32_1 = arith.constant 0 : i32
    %c0_i32_2 = arith.constant 0 : i32
    return %arg0, %c0_i32, %c0_i32_0, %c0_i32_1 : i32, i32, i32, i32
  }
  func.func @transform_1(%arg0: i32) -> (i32, i32, i32) {
    %c0_i32 = arith.constant 0 : i32
    %c0_i32_0 = arith.constant 0 : i32
    %c0_i32_1 = arith.constant 0 : i32
    %c0_i32_2 = arith.constant 0 : i32
    return %c0_i32, %c0_i32_0, %c0_i32_1 : i32, i32, i32
  }
  func.func @transform_2(%arg0: i32) -> (i32, i32) {
    %c0_i32 = arith.constant 0 : i32
    %c0_i32_0 = arith.constant 0 : i32
    %c0_i32_1 = arith.constant 0 : i32
    return %c0_i32, %c0_i32_0 : i32, i32
  }
  func.func @transform_3(%arg0: i32) -> (i32, i32) {
    %c0_i32 = arith.constant 0 : i32
    %c0_i32_0 = arith.constant 0 : i32
    %c0_i32_1 = arith.constant 0 : i32
    return %c0_i32, %c0_i32_0 : i32, i32
  }
  func.func @transform_4(%arg0: i32) -> (i32, i32, i32, i32) {
    %c0_i32 = arith.constant 0 : i32
    %c0_i32_0 = arith.constant 0 : i32
    %c0_i32_1 = arith.constant 0 : i32
    %c0_i32_2 = arith.constant 0 : i32
    return %arg0, %c0_i32, %c0_i32_0, %c0_i32_1 : i32, i32, i32, i32
  }
}

</mosaic_0001>

<bundles_post_ra>
// kernel: tpu_custom_call.1
= control target key start
LH: loop header
LB: loop body
LE: loop exit
PB: predicated region body
PF: predicated region fallthrough
CT: control target
= control target key end

     0   :  { %s3132_s0 = inlined_call_operand.hbm [shape: f32[2,224,8,224], index: 0, kind: input, shape index: {}]   ;;  %s3133_s1 = inlined_call_operand.hbm [shape: bf16[6,32,40], index: 1, kind: input, shape index: {}]   ;;  %s3134_s2 = inlined_call_operand.vmem [shape: f32[16,1], index: 2, kind: input, shape index: {}]   ;;  %s3135_s3 = inlined_call_operand.hbm [shape: bf16[220,220], index: 3, kind: input, shape index: {}]   ;;  %s3136_s4 = inlined_call_operand.hbm [shape: f32[2,110,16,110], index: 4, kind: output, shape index: {}]  }
   0x1   :  { %3142 = sst [smem:[#allocation13_spill]] %s3132_s0 }
   0x2   :  { %9 = vsyncpa [#allocation4], 0 }
   0x3   :  { %11 = vsyncpa [#allocation4 + $0x1], 0 }
   0x4   :  { %12 = vsyncpa [#allocation7], 0 }
   0x5   :  { %13 = vsyncpa [#allocation5], 0 }
   0x6   :  { %15 = vsyncpa [#allocation5 + $0x1], 0  ;;  %s2635_s15 = smov 0   ;;  %s2637_s16 = smov 0  }
   0x7   :  { %s2639_s17 = smov 0   ;;  %s2641_s18 = smov 0  }
   0x8 LB: > { %s2656_s19 = sadd.s32 4294967295, %s2581_s18   ;;  %s1878_s20 = sadd.s32 4294967294, %s2581_s18   ;;  %s2581_s18 = sphi %s2641_s18, %s3164_s18   ;;  %s2577_s17 = sphi %s2639_s17, %s3163_s17   ;;  %s2573_s16 = sphi %s2637_s16, %s3162_s16   ;;  %s2569_s15 = sphi %s2635_s15, %s3161_s15  }
   0x9   : > { %p41_p0 = scmp.ne.s32.totalorder %s2573_s16, %s2569_s15  ;;  %p3137_p1 = scmp.eq.s32.totalorder %s2656_s19, 0 }
   0xa   : > { %p134_p3 = scmp.eq.s32.totalorder %s1878_s20, 1  ;;  %p1879_p5 = scmp.ge.s32.totalorder %s2581_s18, 1 }
   0xb   : > { %p2665_p4 = por %p3137_p1, %p41_p0  ;;  %p141_p7 = scmp.lt.s32.totalorder %s2581_s18, 3 }
   0xc   : > { %p2670_p6 = por %p134_p3, %p41_p0  ;;  %s2587_s24 = smov [#allocation6]  }
   0xd   : > { %s3143_s21 = scalar_select %p2665_p4, 1, 0 }
   0xe   : > { %s3144_s22 = scalar_select %p2670_p6, 1, 0 }
   0xf   : > { %p2675_p8 = pnand %p1879_p5, %p141_p7  ;;  %s153_s25 = sshll.u32 %s2587_s24, 4  ;;  %s154_s25 = int_to_ptr.vmem [resolvable:$true] %s153_s25 }
  0x10   : > { %s2588_s27 = smov [#allocation8]   ;;  %s2440_s29 = scalar_lea.vmem %s154_s25, 1536 }
  0x11   : > { %s3145_s23 = scalar_select %p2675_p8, 1, 0 }
  0x12   : > { %p2111_p9 = pneg %p2675_p8  ;;  %s169_s28 = sshll.u32 %s2588_s27, 4  ;;  %s170_s28 = int_to_ptr.vmem [resolvable:$true] %s169_s28 }
  0x13   : > { %p2441_p13 = scmp.ne.s32.totalorder %s154_s25, %s2440_s29  ;;  %p2448_p5 = scmp.lt.s32.totalorder %s154_s25, %s154_s25 }
  0x14   : > { %p2684_p11 = pnand %p2111_p9, %p3137_p1  ;;  %p2449_p7 = scmp.lt.s32.totalorder %s2440_s29, %s2440_s29 }
  0x16   : > { %p2431_p12 = pneg %p2684_p11  ;;  %p2450_p10 = por %p2449_p7, %p2448_p5 }
  0x18   : > { %p2443_p0 = pnand %p2441_p13, %p2431_p12 }
  0x1a   : > { %p2444_p3 = pneg %p2443_p0 }
  0x1c   : > { %p2451_p9 = pnand %p2450_p10, %p2444_p3 }
  0x1e   : > { %2454 = shalt.err (!%p2451_p9)
}
  0x1f   : > { %s2589_s30 = smov 64   ;;  %s2590_s5 = smov 4  }
  0x20   : > { %2114 = dma.hbm_to_vmem [thread:$0]  (!%p2684_p11), %s3133_s1, 1536, %s154_s25, [#allocation7], %s2589_s30, %s2589_s30, %s2590_s5  }
  0x21   : > { %s2466_s8 = scalar_lea.vmem %s170_s28, 3584  ;;  %p2474_p2 = scmp.lt.s32.totalorder %s170_s28, %s170_s28 }
  0x22   : > { %p2467_p1 = scmp.ne.s32.totalorder %s170_s28, %s2466_s8  ;;  %p2475_p6 = scmp.lt.s32.totalorder %s2466_s8, %s2466_s8 }
  0x24   : > { %p2469_p13 = pnand %p2467_p1, %p2431_p12  ;;  %p2476_p5 = por %p2475_p6, %p2474_p2 }
  0x26   : > { %p2470_p0 = pneg %p2469_p13 }
  0x28   : > { %p2477_p10 = pnand %p2476_p5, %p2470_p0 }
  0x2a   : > { %2480 = shalt.err (!%p2477_p10)
}
  0x2b   : > { %s2591_s9 = smov 128   ;;  %s2592_s10 = smov 8  }
  0x2c   : > { %2117 = dma.hbm_to_vmem [thread:$0]  (!%p2684_p11), %s3135_s3, 3584, %s170_s28, [#allocation7], %s2591_s9, %s2591_s9, %s2592_s10  }
  0x2d   : > { %s2707_s13 = sadd.s32 1, %s2581_s18   ;;  %s28_s20 = sadd.s32 1, %s2577_s17 }
  0x2e   : > { %s25_s14 = ssub.s32 %s2581_s18, %s2707_s13  ;;  %p35_p2 = scmp.ne.s32.totalorder %s2577_s17, %s2573_s16 }
  0x2f   : > { %p26_p1 = scmp.eq.s32.totalorder %s25_s14, 0  ;;  %p36_p6 = scmp.eq.s32.totalorder %s2581_s18, 0 }
  0x30   : > { %p3147_p3 = scmp.eq.s32.totalorder %s2656_s19, 1  ;;  %p2128_p9 = scmp.lt.s32.totalorder %s2581_s18, 2 }
  0x31   : > { %s2716_s24 = scalar_select %p26_p1, %s2577_s17, %s28_s20  }
  0x32   : > { %p37_p12 = por %p36_p6, %p35_p2  ;;  %p2720_p7 = por %p3147_p3, %p35_p2 }
  0x33   : > { %s183_s26 = sand.u32 1, %s2577_s17   ;;  %s2095_s28 = smul.u32 57344, %s2581_s18 }
  0x34   : > { %s3148_s25 = scalar_select %p2720_p7, 1, 0 }
  0x35   : > { %s2094_s27 = smul.u32 3584, %s183_s26  ;;  %p2727_p11 = pnand %p2128_p9, %p37_p12 }
  0x36   : > { %s3150_s0 = sld [smem:[#allocation13_spill]]  ;;  %s2738_s9 = scalar_lea.sflag [#allocation4], %s183_s26 }
  0x37   : > { %s187_s7 = scalar_lea.vmem [#allocation3], %s2094_s27  ;;  %p2483_p0 = pneg %p2727_p11 }
  0x38   : > { %s194_s8 = sshll.u32 %s187_s7, 4  ;;  %s2736_s8 = int_to_ptr.vmem [resolvable:$true] %s194_s8 }
  0x3c   : > { %s2734_s6 = scalar_lea.hbm %s3150_s0, %s2095_s28  ;;  %s2486_s14 = scalar_lea.hbm %s3150_s0, 114688 }
  0x3d   : > { %s2481_s10 = scalar_lea.hbm %s2734_s6, 57344  ;;  %p2487_p1 = scmp.lt.s32.totalorder %s2734_s6, %s3150_s0 }
  0x3e   : > { %p2482_p13 = scmp.ne.s32.totalorder %s2734_s6, %s2481_s10  ;;  %p2488_p2 = scmp.lt.s32.totalorder %s2486_s14, %s2481_s10 }
  0x40   : > { %p2484_p5 = pnand %p2483_p0, %p2482_p13  ;;  %p2489_p6 = por %p2488_p2, %p2487_p1 }
  0x42   : > { %p2485_p10 = pneg %p2484_p5 }
  0x44   : > { %p2490_p12 = pnand %p2489_p6, %p2485_p10 }
  0x46   : > { %2493 = shalt.err (!%p2490_p12)
}
  0x47   : > { %s2494_s26 = scalar_lea.vmem %s2736_s8, 57344  ;;  %s2593_s27 = smov [#allocation3]  }
  0x48   : > { %p2495_p3 = scmp.ne.s32.totalorder %s2736_s8, %s2494_s26  ;;  %s2499_s30 = sshll.u32 %s2593_s27, 4  ;;  %s2500_s30 = int_to_ptr.vmem [resolvable:$false] %s2499_s30 }
  0x49   : > { %s2501_s5 = scalar_lea.vmem %s2500_s30, 114688  ;;  %p2502_p5 = scmp.lt.s32.totalorder %s2736_s8, %s2500_s30 }
  0x4a   : > { %p2497_p9 = pnand %p2495_p3, %p2483_p0  ;;  %p2503_p7 = scmp.lt.s32.totalorder %s2501_s5, %s2494_s26 }
  0x4c   : > { %p2498_p13 = pneg %p2497_p9  ;;  %p2504_p4 = por %p2503_p7, %p2502_p5 }
  0x4e   : > { %p2505_p8 = pnand %p2504_p4, %p2498_p13 }
  0x50   : > { %2508 = shalt.err (!%p2505_p8)
}
  0x51   : > { %s2594_s7 = smov 256   ;;  %s2595_s10 = smov 16  }
  0x52   : > { %2121 = dma.hbm_to_vmem [thread:$0]  (!%p2727_p11), %s2734_s6, 57344, %s2736_s8, %s2738_s9, %s2594_s7, %s2594_s7, %s2595_s10  }
  0x53   : > { %p3151_p0 = scmp.ne.s32.totalorder %s3145_s23, 0 }
  0x54   : > { %s2762_s11 = sand.u32 (!%p3151_p0), 1, %s2573_s16   ;;  %p3152_p4 = scmp.ne.s32.totalorder (!%p3151_p0), %s3143_s21, 0 }
  0x55   : > { %206 = sbr.rel (%p3151_p0) target bundleno = 1024 (0x400), region = 36  ;;  %s209_s14 = scalar_lea.sflag (!%p3151_p0), [#allocation4], %s2762_s11 }
  0x56   : > { %s2096_s12 = smul.u32 (!%p3151_p0), 3584, %s2762_s11 }
  0x58   : > { %s2766_s20 = scalar_lea.vmem (!%p3151_p0), [#allocation3], %s2096_s12 }
  0x5a   : > { %2556 = dma.done.wait (%p3152_p4), %s209_s14, 57344  }
  0x5b   : > { %2558 = vsyncadd (%p3152_p4), %s209_s14, 4294909952  ;;  %p3153_p8 = scmp.eq.s32.totalorder %s2656_s19, 0 }
  0x5d   : > { %2560 = dma.done.wait (%p3153_p8), [#allocation7], 5120   ;;  %p3154_p7 = pmov %p3153_p8 }
  0x5e   : > { %v2596_v0 = vmov 0   ;;  %v246_v1 = vld [vmem:[%s3134_s2] sm:$0xff]  ;;  %v258_v2 = vld [vmem:[%s2766_s20] sm:$0xff]  ;;  %vm326_vm0 = vcmask 1043456   ;;  %vm327_vm1 = vcmask 752644   ;;  %v259_v3 = vld [vmem:[%s2766_s20 + $0x8] sm:$0xff] }
  0x5f   : > { %2562 = vsyncadd (%p3154_p7), [#allocation7], 4294962176  ;;  %2194 = vset.pattern.permute.xlu0 %v2596_v0  ;;  %v247_v4 = vld [vmem:[%s3134_s2 + $0x8] sm:$0xff]  ;;  %v2195_v5 = vpack.i.bf16 %v259_v3, %v258_v2  ;;  %v2056_v6 = vpack.c.bf16 %v259_v3, %v258_v2  ;;  %v1892_v7 = vld [vmem:[%s2766_s20 + $0x10] sm:$0xff]  ;;  %s2597_s8 = smov 127   ;;  %s2598_s9 = smov 126  }
  0x60   : > { %250 = vperm.xlu0 %2194, %v246_v1   ;;  %v1893_v8 = vld [vmem:[%s2766_s20 + $0x18] sm:$0xff]  ;;  %vm2787_vm2 = vmor %vm327_vm1, %vm326_vm0  ;;  %v1899_v11 = vld [vmem:[%s2766_s20 + $0x20] sm:$0xff]  ;;  %s2599_s28 = smov 125   ;;  %s2600_s26 = smov 124   ;;  %vm266_vm3 = vcmask 1039360   ;;  %vm274_vm4 = vcmask 1031168  }
  0x61   : > { %v2061_v10 = vpack.c.bf16 %v1893_v8, %v1892_v7  ;;  %v1900_v12 = vld [vmem:[%s2766_s20 + $0x28] sm:$0xff]  ;;  %2196 = vrot.lane.b32.xlu1 %v2195_v5, %s2597_s8  ;;  %329 = vst.msk [vmem:[#allocation2] sm:$0xff] %vm2787_vm2, %v2056_v6  ;;  %v1906_v14 = vld [vmem:[%s2766_s20 + $0x30] sm:$0xff]  ;;  %v1907_v15 = vld [vmem:[%s2766_s20 + $0x38] sm:$0xff]  ;;  %v2215_v17 = vpack.i.bf16 %v1893_v8, %v1892_v7  ;;  %s2097_s27 = smul.u32 1760, %s2762_s11  ;;  %vm290_vm5 = vcmask 1014784  }
  0x62   : > { %v2066_v13 = vpack.c.bf16 %v1900_v12, %v1899_v11  ;;  %v2071_v16 = vpack.c.bf16 %v1907_v15, %v1906_v14  ;;  %v2235_v18 = vpack.i.bf16 %v1900_v12, %v1899_v11  ;;  %v2255_v19 = vpack.i.bf16 %v1907_v15, %v1906_v14  ;;  %s2860_s5 = smov 0  }
  0x63   : > { %400 = vst.msk [vmem:[#allocation2 + $0x28] sm:$0xff] %vm2787_vm2, %v2061_v10  ;;  %vm282_vm6 = vcmask 1022976   ;;  %s2858_s30 = scalar_lea.vmem [#allocation9], %s2097_s27 }
  0x64   : > { %255 = vperm.xlu0 %2194, %v247_v4   ;;  %471 = vst.msk [vmem:[#allocation2 + $0x50] sm:$0xff] %vm2787_vm2, %v2066_v13  ;;  %542 = vst.msk [vmem:[#allocation2 + $0x78] sm:$0xff] %vm2787_vm2, %v2071_v16 }
  0x65   : > { %2201 = vrot.lane.b32.xlu1 %v2195_v5, %s2598_s9 }
  0x68   : > { %2206 = vrot.lane.b32.xlu0 %v2195_v5, %s2599_s28 }
  0x69   : > { %2211 = vrot.lane.b32.xlu1 %v2195_v5, %s2600_s26 }
  0x6c   : > { %2216 = vrot.lane.b32.xlu0 %v2215_v17, %s2597_s8 }
  0x6d   : > { %2221 = vrot.lane.b32.xlu1 %v2215_v17, %s2598_s9 }
  0x70   : > { %2226 = vrot.lane.b32.xlu0 %v2215_v17, %s2599_s28 }
  0x71   : > { %2231 = vrot.lane.b32.xlu1 %v2215_v17, %s2600_s26 }
  0x74   : > { %2236 = vrot.lane.b32.xlu0 %v2235_v18, %s2597_s8 }
  0x75   : > { %2241 = vrot.lane.b32.xlu1 %v2235_v18, %s2598_s9 }
  0x78   : > { %2246 = vrot.lane.b32.xlu0 %v2235_v18, %s2599_s28 }
  0x79   : > { %2251 = vrot.lane.b32.xlu1 %v2235_v18, %s2600_s26 }
  0x7c   : > { %2256 = vrot.lane.b32.xlu0 %v2255_v19, %s2597_s8 }
  0x7d   : > { %2261 = vrot.lane.b32.xlu1 %v2255_v19, %s2598_s9 }
  0x80   : > { %2266 = vrot.lane.b32.xlu0 %v2255_v19, %s2599_s28 }
  0x81   : > { %2271 = vrot.lane.b32.xlu1 %v2255_v19, %s2600_s26 }
  0xd3   : > { %v2197_v20 = vpop.permute.xlu1 %2196 }
  0xd4   : > { %v2199_v21 = vunpack.i.h.bf16 %v2197_v20  ;;  %v2198_v22 = vunpack.i.l.bf16 %v2197_v20 }
  0xd6   : > { %v267_v23 = vsel %vm266_vm3, %v2198_v22, %v2199_v21 }
  0xd7   : > { %v2057_v24 = vpack.c.bf16 %v2199_v21, %v267_v23  ;;  %v2202_v25 = vpop.permute.xlu1 %2201 }
  0xd8   : > { %v2204_v26 = vunpack.i.h.bf16 %v2202_v25  ;;  %v2203_v27 = vunpack.i.l.bf16 %v2202_v25 }
  0xd9   : > { %330 = vst.msk [vmem:[#allocation2 + $0x8] sm:$0xff] %vm2787_vm2, %v2057_v24 }
  0xda   : > { %v275_v29 = vsel %vm274_vm4, %v2203_v27, %v2204_v26 }
  0xdb   : > { %v2807_v28 = vpop.permute.xlu0 %250  ;;  %v2058_v30 = vpack.c.bf16 %v2204_v26, %v275_v29  ;;  %v2212_v31 = vpop.permute.xlu1 %2211 }
  0xdc   : > { %v2214_v32 = vunpack.i.h.bf16 %v2212_v31  ;;  %v2213_v33 = vunpack.i.l.bf16 %v2212_v31 }
  0xdd   : > { %331 = vst.msk [vmem:[#allocation2 + $0x10] sm:$0xff] %vm2787_vm2, %v2058_v30 }
  0xde   : > { %v291_v35 = vsel %vm290_vm5, %v2213_v33, %v2214_v32 }
  0xdf   : > { %v2812_v34 = vpop.permute.xlu0 %255  ;;  %v2060_v36 = vpack.c.bf16 %v2214_v32, %v291_v35  ;;  %v2222_v37 = vpop.permute.xlu1 %2221 }
  0xe0   : > { %v2224_v38 = vunpack.i.h.bf16 %v2222_v37  ;;  %v2223_v39 = vunpack.i.l.bf16 %v2222_v37 }
  0xe1   : > { %333 = vst.msk [vmem:[#allocation2 + $0x20] sm:$0xff] %vm2787_vm2, %v2060_v36 }
  0xe2   : > { %v350_v43 = vsel %vm274_vm4, %v2223_v39, %v2224_v38 }
  0xe3   : > { %v2207_v40 = vpop.permute.xlu0 %2206  ;;  %v2063_v44 = vpack.c.bf16 %v2224_v38, %v350_v43  ;;  %v2232_v45 = vpop.permute.xlu1 %2231 }
  0xe4   : > { %v2209_v41 = vunpack.i.h.bf16 %v2207_v40  ;;  %v2208_v42 = vunpack.i.l.bf16 %v2207_v40  ;;  %v2234_v47 = vunpack.i.h.bf16 %v2232_v45  ;;  %v2233_v48 = vunpack.i.l.bf16 %v2232_v45 }
  0xe5   : > { %402 = vst.msk [vmem:[#allocation2 + $0x38] sm:$0xff] %vm2787_vm2, %v2063_v44 }
  0xe6   : > { %v283_v46 = vsel %vm282_vm6, %v2208_v42, %v2209_v41  ;;  %v364_v53 = vsel %vm290_vm5, %v2233_v48, %v2234_v47 }
  0xe7   : > { %v2059_v49 = vpack.c.bf16 %v2209_v41, %v283_v46  ;;  %v2217_v50 = vpop.permute.xlu0 %2216  ;;  %v2065_v54 = vpack.c.bf16 %v2234_v47, %v364_v53  ;;  %v2242_v55 = vpop.permute.xlu1 %2241 }
  0xe8   : > { %v2219_v51 = vunpack.i.h.bf16 %v2217_v50  ;;  %v2218_v52 = vunpack.i.l.bf16 %v2217_v50  ;;  %v2244_v57 = vunpack.i.h.bf16 %v2242_v55  ;;  %v2243_v58 = vunpack.i.l.bf16 %v2242_v55 }
  0xe9   : > { %332 = vst.msk [vmem:[#allocation2 + $0x18] sm:$0xff] %vm2787_vm2, %v2059_v49  ;;  %404 = vst.msk [vmem:[#allocation2 + $0x48] sm:$0xff] %vm2787_vm2, %v2065_v54 }
  0xea   : > { %v343_v56 = vsel %vm266_vm3, %v2218_v52, %v2219_v51  ;;  %v421_v63 = vsel %vm274_vm4, %v2243_v58, %v2244_v57 }
  0xeb   : > { %v2062_v59 = vpack.c.bf16 %v2219_v51, %v343_v56  ;;  %v2227_v60 = vpop.permute.xlu0 %2226  ;;  %v2068_v0 = vpack.c.bf16 %v2244_v57, %v421_v63  ;;  %v2252_v1 = vpop.permute.xlu1 %2251 }
  0xec   : > { %v2229_v61 = vunpack.i.h.bf16 %v2227_v60  ;;  %v2228_v62 = vunpack.i.l.bf16 %v2227_v60  ;;  %v2254_v3 = vunpack.i.h.bf16 %v2252_v1  ;;  %v2253_v4 = vunpack.i.l.bf16 %v2252_v1 }
  0xed   : > { %401 = vst.msk [vmem:[#allocation2 + $0x30] sm:$0xff] %vm2787_vm2, %v2062_v59  ;;  %473 = vst.msk [vmem:[#allocation2 + $0x60] sm:$0xff] %vm2787_vm2, %v2068_v0 }
  0xee   : > { %v357_v2 = vsel %vm282_vm6, %v2228_v62, %v2229_v61  ;;  %v435_v10 = vsel %vm290_vm5, %v2253_v4, %v2254_v3 }
  0xef   : > { %v2064_v5 = vpack.c.bf16 %v2229_v61, %v357_v2  ;;  %v2237_v6 = vpop.permute.xlu0 %2236  ;;  %v2070_v11 = vpack.c.bf16 %v2254_v3, %v435_v10  ;;  %v2262_v12 = vpop.permute.xlu1 %2261 }
  0xf0   : > { %v2239_v7 = vunpack.i.h.bf16 %v2237_v6  ;;  %v2238_v8 = vunpack.i.l.bf16 %v2237_v6  ;;  %v2264_v14 = vunpack.i.h.bf16 %v2262_v12  ;;  %v2263_v15 = vunpack.i.l.bf16 %v2262_v12 }
  0xf1   : > { %403 = vst.msk [vmem:[#allocation2 + $0x40] sm:$0xff] %vm2787_vm2, %v2064_v5  ;;  %475 = vst.msk [vmem:[#allocation2 + $0x70] sm:$0xff] %vm2787_vm2, %v2070_v11 }
  0xf2   : > { %v414_v13 = vsel %vm266_vm3, %v2238_v8, %v2239_v7  ;;  %v492_v20 = vsel %vm274_vm4, %v2263_v15, %v2264_v14 }
  0xf3   : > { %v2067_v16 = vpack.c.bf16 %v2239_v7, %v414_v13  ;;  %v2247_v17 = vpop.permute.xlu0 %2246  ;;  %v2073_v21 = vpack.c.bf16 %v2264_v14, %v492_v20  ;;  %v2272_v22 = vpop.permute.xlu1 %2271 }
  0xf4   : > { %v2249_v18 = vunpack.i.h.bf16 %v2247_v17  ;;  %v2248_v19 = vunpack.i.l.bf16 %v2247_v17  ;;  %v2274_v24 = vunpack.i.h.bf16 %v2272_v22  ;;  %v2273_v25 = vunpack.i.l.bf16 %v2272_v22 }
  0xf5   : > { %472 = vst.msk [vmem:[#allocation2 + $0x58] sm:$0xff] %vm2787_vm2, %v2067_v16  ;;  %544 = vst.msk [vmem:[#allocation2 + $0x88] sm:$0xff] %vm2787_vm2, %v2073_v21 }
  0xf6   : > { %v428_v23 = vsel %vm282_vm6, %v2248_v19, %v2249_v18  ;;  %v506_v31 = vsel %vm290_vm5, %v2273_v25, %v2274_v24 }
  0xf7   : > { %v2069_v26 = vpack.c.bf16 %v2249_v18, %v428_v23  ;;  %v2257_v27 = vpop.permute.xlu0 %2256  ;;  %v2075_v32 = vpack.c.bf16 %v2274_v24, %v506_v31 }
  0xf8   : > { %v2259_v29 = vunpack.i.h.bf16 %v2257_v27  ;;  %v2258_v30 = vunpack.i.l.bf16 %v2257_v27 }
  0xf9   : > { %474 = vst.msk [vmem:[#allocation2 + $0x68] sm:$0xff] %vm2787_vm2, %v2069_v26  ;;  %546 = vst.msk [vmem:[#allocation2 + $0x98] sm:$0xff] %vm2787_vm2, %v2075_v32 }
  0xfa   : > { %v485_v33 = vsel %vm266_vm3, %v2258_v30, %v2259_v29 }
  0xfb   : > { %v2072_v35 = vpack.c.bf16 %v2259_v29, %v485_v33  ;;  %v2267_v36 = vpop.permute.xlu0 %2266 }
  0xfc   : > { %v2269_v37 = vunpack.i.h.bf16 %v2267_v36  ;;  %v2268_v38 = vunpack.i.l.bf16 %v2267_v36 }
  0xfd   : > { %543 = vst.msk [vmem:[#allocation2 + $0x80] sm:$0xff] %vm2787_vm2, %v2072_v35 }
  0xfe   : > { %v499_v39 = vsel %vm282_vm6, %v2268_v38, %v2269_v37 }
  0xff   : > { %v2074_v40 = vpack.c.bf16 %v2269_v37, %v499_v39 }
 0x101   : > { %545 = vst.msk [vmem:[#allocation2 + $0x90] sm:$0xff] %vm2787_vm2, %v2074_v40 }
 0x102 LB: >> { %s2076_s7 = sshll.u32 %s2585_s5, 5  ;;  %s2867_s10 = sshll.u32 %s2585_s5, 1  ;;  %v2605_v49 = vmov 0   ;;  %vm819_vm7 = vcmask 326656   ;;  %vm1667_vm8 = vcmask 1045504   ;;  %vm1663_vm9 = vcmask 752640   ;;  %s2585_s5 = sphi %s2860_s5, %s552_s5  }
 0x103   : >> { %s1803_s12 = scalar_lea.vmem %s2766_s20, %s2076_s7 [#allocation3]  ;;  %s2871_s14 = sadd.s32 4, %s2867_s10  ;;  %864 = vmatprep.mubr.bf16.mxu1 %v2605_v49  ;;  %1091 = vmatprep.mubr.bf16.mxu0 %v2605_v49  ;;  %vm1729_vm10 = vcmask 146432   ;;  %vm1742_vm11 = vcmask 900096  }
 0x104   : >> { %v1919_v41 = vld [vmem:[%s1803_s12 + $0x40] sm:$0xff]  ;;  %v1920_v42 = vld [vmem:[%s1803_s12 + $0x48] sm:$0xff]  ;;  %s556_s23 = ssub.s32 0, %s2871_s14  ;;  %v2874_v43 = vld [vmem:[%s1803_s12 + $0x50] sm:$0xff]  ;;  %s2878_s21 = sadd.s32 5, %s2867_s10 }
 0x105   : >> { %v2285_v44 = vpack.i.bf16 %v1920_v42, %v1919_v41  ;;  %s1914_s29 = smin.u32 %s556_s23, %s2871_s14  ;;  %v2880_v45 = vld [vmem:[%s1803_s12 + $0x58] sm:$0xff]  ;;  %s3141_s6 = smov 125   ;;  %v2077_v47 = vpack.c.bf16 %v1920_v42, %v1919_v41 }
 0x106   : >> { %2417 = sdivrem.u32 %s1914_s29, 6  ;;  %v2084_v46 = vpack.c.bf16 %v2880_v45, %v2874_v43  ;;  %s645_s8 = ssub.s32 0, %s2878_s21  ;;  %v2300_v48 = vpack.i.bf16 %v2880_v45, %v2874_v43 }
 0x107   : >> { %2286 = vrot.lane.b32.xlu1 %v2285_v44, %s3141_s6  ;;  %s1927_s9 = smin.u32 %s645_s8, %s2878_s21  ;;  %s737_s28 = ssub.s32 0, %s2867_s10 }
 0x108   : >> { %2419 = sdivrem.u32 %s1927_s9, 6  ;;  %s1940_s26 = smin.u32 %s2867_s10, %s737_s28 }
 0x109   : >> { %2421 = sdivrem.u32 %s1940_s26, 6  ;;  %s2890_s27 = sadd.s32 1, %s2867_s10 }
 0x10a   : >> { %s764_s7 = ssub.s32 0, %s2890_s27  ;;  %s2895_s23 = sadd.s32 2, %s2867_s10 }
 0x10b   : >> { %s1944_s12 = smin.u32 %s764_s7, %s2890_s27  ;;  %p555_p11 = scmp.lt.s32.totalorder %s2871_s14, 0 }
 0x10c   : >> { %2423 = sdivrem.u32 %s1944_s12, 6  ;;  %s992_s29 = ssub.s32 0, %s2895_s23 }
 0x10d   : >> { %s1970_s8 = smin.u32 %s992_s29, %s2895_s23  ;;  %s2906_s7 = sadd.s32 3, %s2867_s10 }
 0x10e   : >> { %2425 = sdivrem.u32 %s1970_s8, 6  ;;  %s1127_s14 = ssub.s32 0, %s2906_s7 }
 0x10f   : >> { %s2418_s6 = spop.drf %2417  ;;  %s1985_s12 = smin.u32 %s1127_s14, %s2906_s7 }
 0x110   : >> { %s560_s0 = ssub.s32 0, %s2418_s6  ;;  %s2602_s29 = smov 127  }
 0x111   : >> { %s3166_s0 = smov (!%p555_p11, %s560_s0), %s2418_s6  ;;  %2276 = vrot.lane.b32.xlu0 %v2285_v44, %s2602_s29  ;;  %2427 = sdivrem.u32 %s1985_s12, 6 }
 0x112   : >> { %p1916_p10 = scmp.lt.s32.totalorder %s3166_s0, 0  ;;  %s566_s9 = sadd.s32 6, %s3166_s0 }
 0x113   : >> { %s2603_s6 = smov 124   ;;  %s3157_s8 = smov 125  }
 0x114   : >> { %s3168_s9 = smov (!%p1916_p10, %s566_s9), %s3166_s0  ;;  %2291 = vrot.lane.b32.xlu1 %v2285_v44, %s2603_s6  ;;  %s2604_s0 = smov 126  }
 0x115   : >> { %s2082_s28 = smul.u32 40, %s3168_s9  ;;  %2281 = vrot.lane.b32.xlu0 %v2285_v44, %s2604_s0  ;;  %s2420_s9 = spop.drf %2419 }
 0x116   : >> { %p644_p1 = scmp.lt.s32.totalorder %s2878_s21, 0  ;;  %s2920_s12 = spop.drf %2421 }
 0x117   : >> { %s2900_s26 = scalar_lea.vmem [#allocation2], %s2082_s28  ;;  %s649_s28 = ssub.s32 0, %s2420_s9 }
 0x118   : >> { %638 = vst.msk [vmem:[%s2900_s26] sm:$0xff] %vm2787_vm2, %v2077_v47  ;;  %2301 = vrot.lane.b32.xlu1 %v2300_v48, %s2604_s0  ;;  %s3170_s28 = smov (!%p644_p1, %s649_s28), %s2420_s9  ;;  %p991_p6 = scmp.lt.s32.totalorder %s2895_s23, 0 }
 0x119   : >> { %2296 = vrot.lane.b32.xlu0 %v2300_v48, %s2602_s29  ;;  %p1929_p2 = scmp.lt.s32.totalorder %s3170_s28, 0  ;;  %s655_s14 = sadd.s32 6, %s3170_s28 }
 0x11a   : >> { %s2922_s29 = spop.drf %2423  ;;  %p763_p12 = scmp.lt.s32.totalorder %s2890_s27, 0 }
 0x11b   : >> { %s3172_s14 = smov (!%p1929_p2, %s655_s14), %s3170_s28  ;;  %p736_p3 = scmp.lt.s32.totalorder %s2867_s10, 0 }
 0x11c   : >> { %2311 = vrot.lane.b32.xlu1 %v2300_v48, %s2603_s6  ;;  %s2426_s6 = spop.drf %2425  ;;  %s2089_s0 = smul.u32 40, %s3172_s14 }
 0x11d   : >> { %2306 = vrot.lane.b32.xlu0 %v2300_v48, %s3157_s8  ;;  %s996_s21 = ssub.s32 0, %s2426_s6  ;;  %s768_s8 = ssub.s32 0, %s2922_s29 }
 0x11e   : >> { %s741_s9 = ssub.s32 0, %s2920_s12  ;;  %s3174_s21 = smov (!%p991_p6, %s996_s21), %s2426_s6 }
 0x11f   : >> { %s3176_s8 = smov (!%p763_p12, %s768_s8), %s2922_s29  ;;  %s3178_s9 = smov (!%p736_p3, %s741_s9), %s2920_s12 }
 0x120   : >> { %s2956_s23 = spop.drf %2427  ;;  %p1972_p9 = scmp.lt.s32.totalorder %s3174_s21, 0 }
 0x121   : >> { %s2962_s27 = scalar_lea.vmem [#allocation2], %s2089_s0  ;;  %p1946_p13 = scmp.lt.s32.totalorder %s3176_s8, 0 }
 0x122   : >> { %s1002_s10 = sadd.s32 6, %s3174_s21  ;;  %s774_s28 = sadd.s32 6, %s3176_s8 }
 0x123   : >> { %p1126_p5 = scmp.lt.s32.totalorder %s2906_s7, 0  ;;  %s1131_s14 = ssub.s32 0, %s2956_s23 }
 0x124   : >> { %s3180_s10 = smov (!%p1972_p9, %s1002_s10), %s3174_s21  ;;  %s3182_s28 = smov (!%p1946_p13, %s774_s28), %s3176_s8 }
 0x125   : >> { %p1942_p0 = scmp.lt.s32.totalorder %s3178_s9, 0  ;;  %s3184_s14 = smov (!%p1126_p5, %s1131_s14), %s2956_s23 }
 0x126   : >> { %s2092_s7 = smul.u32 40, %s3180_s10  ;;  %s747_s12 = sadd.s32 6, %s3178_s9 }
 0x127   : >> { %s2091_s29 = smul.u32 40, %s3182_s28  ;;  %s3186_s12 = smov (!%p1942_p0, %s747_s12), %s3178_s9 }
 0x128   : >> { %p1987_p4 = scmp.lt.s32.totalorder %s3184_s14, 0  ;;  %s1137_s6 = sadd.s32 6, %s3184_s14 }
 0x129   : >> { %s3000_s21 = scalar_lea.vmem [#allocation2], %s2091_s29  ;;  %s3003_s0 = scalar_lea.vmem [#allocation2], %s2092_s7 }
 0x12a   : >> { %s2090_s8 = smul.u32 40, %s3186_s12  ;;  %s3188_s6 = smov (!%p1987_p4, %s1137_s6), %s3184_s14 }
 0x12b   : >> { %s2093_s9 = smul.u32 40, %s3188_s6 }
 0x12c   : >> { %s3018_s23 = scalar_lea.vmem [#allocation2], %s2090_s8 }
 0x12d   : >> { %s3025_s10 = scalar_lea.vmem [#allocation2], %s2093_s9 }
 0x179   : >> { %v2287_v50 = vpop.permute.xlu1 %2286 }
 0x17a   : >> { %v2289_v51 = vunpack.i.h.bf16 %v2287_v50  ;;  %v2288_v52 = vunpack.i.l.bf16 %v2287_v50  ;;  %v2333_v50 = vld [vmem:[#allocation6 + $0x10] sm:$0xff]  }
 0x17c   : >> { %v593_v53 = vsel %vm282_vm6, %v2288_v52, %v2289_v51  ;;  %v2335_v52 = vld [vmem:[#allocation6 + $0x20] sm:$0xff]  }
 0x17d   : >> { %v2080_v54 = vpack.c.bf16 %v2289_v51, %v593_v53 }
 0x17f   : >> { %641 = vst.msk [vmem:[%s2900_s26 + $0x18] sm:$0xff] %vm2787_vm2, %v2080_v54 }
 0x183   : >> { %v2277_v55 = vpop.permute.xlu0 %2276 }
 0x184   : >> { %v2279_v56 = vunpack.i.h.bf16 %v2277_v55  ;;  %v2278_v57 = vunpack.i.l.bf16 %v2277_v55 }
 0x186   : >> { %v2292_v58 = vpop.permute.xlu1 %2291  ;;  %v579_v59 = vsel %vm266_vm3, %v2278_v57, %v2279_v56 }
 0x187   : >> { %v2294_v60 = vunpack.i.h.bf16 %v2292_v58  ;;  %v2293_v61 = vunpack.i.l.bf16 %v2292_v58  ;;  %v2078_v62 = vpack.c.bf16 %v2279_v56, %v579_v59  ;;  %v2282_v63 = vpop.permute.xlu0 %2281 }
 0x188   : >> { %v2284_v1 = vunpack.i.h.bf16 %v2282_v63  ;;  %v2283_v2 = vunpack.i.l.bf16 %v2282_v63  ;;  %v2361_v63 = vld [vmem:[#allocation6 + $0x28] sm:$0xff]  }
 0x189   : >> { %v600_v0 = vsel %vm290_vm5, %v2293_v61, %v2294_v60  ;;  %639 = vst.msk [vmem:[%s2900_s26 + $0x8] sm:$0xff] %vm2787_vm2, %v2078_v62 }
 0x18a   : >> { %v2081_v3 = vpack.c.bf16 %v2294_v60, %v600_v0  ;;  %v2302_v4 = vpop.permute.xlu1 %2301  ;;  %v586_v5 = vsel %vm274_vm4, %v2283_v2, %v2284_v1  ;;  %v2349_v60 = vld [vmem:[#allocation6 + $0x18] sm:$0xff]  }
 0x18b   : >> { %v2304_v6 = vunpack.i.h.bf16 %v2302_v4  ;;  %v2303_v7 = vunpack.i.l.bf16 %v2302_v4  ;;  %v2079_v8 = vpack.c.bf16 %v2284_v1, %v586_v5  ;;  %v2297_v10 = vpop.permute.xlu0 %2296  ;;  %v2351_v4 = vld [vmem:[#allocation6] sm:$0xff]  }
 0x18c   : >> { %642 = vst.msk [vmem:[%s2900_s26 + $0x20] sm:$0xff] %vm2787_vm2, %v2081_v3  ;;  %v2299_v12 = vunpack.i.h.bf16 %v2297_v10  ;;  %v2298_v13 = vunpack.i.l.bf16 %v2297_v10 }
 0x18d   : >> { %v675_v11 = vsel %vm274_vm4, %v2303_v7, %v2304_v6  ;;  %640 = vst.msk [vmem:[%s2900_s26 + $0x10] sm:$0xff] %vm2787_vm2, %v2079_v8 }
 0x18e   : >> { %v2086_v14 = vpack.c.bf16 %v2304_v6, %v675_v11  ;;  %v2312_v15 = vpop.permute.xlu1 %2311  ;;  %727 = vst.msk [vmem:[%s2962_s27] sm:$0xff] %vm2787_vm2, %v2084_v46  ;;  %v668_v16 = vsel %vm266_vm3, %v2298_v13, %v2299_v12  ;;  %v2367_v6 = vld [vmem:[#allocation6 + $0x40] sm:$0xff]   ;;  %v2372_v13 = vld [vmem:[#allocation6 + $0x48] sm:$0xff]  }
 0x18f   : >> { %v2314_v17 = vunpack.i.h.bf16 %v2312_v15  ;;  %v2313_v18 = vunpack.i.l.bf16 %v2312_v15  ;;  %v2085_v19 = vpack.c.bf16 %v2299_v12, %v668_v16  ;;  %v2307_v20 = vpop.permute.xlu0 %2306  ;;  %v2359_v12 = vld [vmem:[#allocation6 + $0x8] sm:$0xff]  }
 0x190   : >> { %729 = vst.msk [vmem:[%s2962_s27 + $0x10] sm:$0xff] %vm2787_vm2, %v2086_v14  ;;  %v2309_v22 = vunpack.i.h.bf16 %v2307_v20  ;;  %v2308_v23 = vunpack.i.l.bf16 %v2307_v20 }
 0x191   : >> { %v689_v21 = vsel %vm290_vm5, %v2313_v18, %v2314_v17  ;;  %728 = vst.msk [vmem:[%s2962_s27 + $0x8] sm:$0xff] %vm2787_vm2, %v2085_v19 }
 0x192   : >> { %v2088_v24 = vpack.c.bf16 %v2314_v17, %v689_v21  ;;  %v682_v25 = vsel %vm282_vm6, %v2308_v23, %v2309_v22  ;;  %v2362_v17 = vld [vmem:[#allocation6 + $0x30] sm:$0xff]   ;;  %v2371_v23 = vld [vmem:[#allocation6 + $0x38] sm:$0xff]  }
 0x193   : >> { %v2087_v26 = vpack.c.bf16 %v2309_v22, %v682_v25  ;;  %v2373_v25 = vld [vmem:[#allocation6 + $0x50] sm:$0xff]  }
 0x194   : >> { %731 = vst.msk [vmem:[%s2962_s27 + $0x20] sm:$0xff] %vm2787_vm2, %v2088_v24 }
 0x195   : >> { %730 = vst.msk [vmem:[%s2962_s27 + $0x18] sm:$0xff] %vm2787_vm2, %v2087_v26  ;;  %v2374_v26 = vld [vmem:[#allocation6 + $0x58] sm:$0xff]  }
 0x198   : >> { %v2370_v22 = vld [vmem:[%s2962_s27 + $0x4] ss:$8 sps:$4 sm:$0xff]   ;;  %v2368_v24 = vld [vmem:[%s2962_s27] ss:$8 sps:$4 sm:$0xff]  }
 0x19b   : >> { %v1382_v14 = vld [vmem:[%s2962_s27 + $0x20] sm:$0xff] }
 0x19c   : >> { %v783_v27 = vld [vmem:[%s3000_s21 + $0x20] sm:$0xff]  ;;  %v2319_v35 = vld [vmem:[%s3000_s21 + $0x14] ss:$8 sps:$4 sm:$0xff]   ;;  %v2323_v39 = vld [vmem:[%s3000_s21 + $0x10] ss:$8 sps:$4 sm:$0xff]   ;;  %v2018_v16 = vcombine.high %v1382_v14, %v1382_v14  ;;  %v2017_v18 = vcombine.low %v1382_v14, %v1382_v14 }
 0x19d   : >> { %v1011_v29 = vld [vmem:[%s3003_s0 + $0x20] sm:$0xff]  ;;  %v1955_v30 = vcombine.high %v783_v27, %v783_v27  ;;  %v1954_v32 = vcombine.low %v783_v27, %v783_v27  ;;  %v2321_v38 = vld [vmem:[%s3003_s0 + $0x14] ss:$8 sps:$4 sm:$0xff]   ;;  %v2324_v40 = vld [vmem:[%s3003_s0 + $0x10] ss:$8 sps:$4 sm:$0xff]  }
 0x19e   : >> { %v1981_v31 = vcombine.high %v1011_v29, %v1011_v29  ;;  %v1980_v33 = vcombine.low %v1011_v29, %v1011_v29  ;;  %v2325_v41 = vld [vmem:[%s3000_s21 + $0x4] ss:$8 sps:$4 sm:$0xff]   ;;  %v2329_v45 = vld [vmem:[%s3000_s21] ss:$8 sps:$4 sm:$0xff]   ;;  %v2339_v54 = vld [vmem:[%s3018_s23 + $0x14] ss:$8 sps:$4 sm:$0xff]  }
 0x19f   : >> { %1956 = vmatprep.subr.msk.bf16.mxu1 %vm326_vm0, %v1955_v30  ;;  %v827_v36 = vsel %vm326_vm0, %v1954_v32, 0  ;;  %v2327_v42 = vld [vmem:[%s3003_s0 + $0x4] ss:$8 sps:$4 sm:$0xff]   ;;  %v2330_v46 = vld [vmem:[%s3003_s0] ss:$8 sps:$4 sm:$0xff]   ;;  %v1425_v19 = vsel %vm326_vm0, %v2017_v18, 0 }
 0x1a0   : >> { %1982 = vmatprep.subr.msk.bf16.mxu0 %vm326_vm0, %v1981_v31  ;;  %v1054_v37 = vsel %vm326_vm0, %v1980_v33, 0  ;;  %843 = vmatpush1.bf16.msra.mxu1 %v827_v36  ;;  %v756_v43 = vld [vmem:[%s3018_s23 + $0x20] sm:$0xff]  ;;  %v2342_v57 = vld [vmem:[%s2900_s26 + $0x14] ss:$8 sps:$4 sm:$0xff]   ;;  %v2337_v58 = vld [vmem:[%s3018_s23 + $0x10] ss:$8 sps:$4 sm:$0xff]  }
 0x1a1   : >> { %1070 = vmatpush1.bf16.msra.mxu0 %v1054_v37  ;;  %844 = vmatprep.subr.bf16.mxu1 %v2319_v35  ;;  %v1264_v44 = vld [vmem:[%s2900_s26 + $0x20] sm:$0xff]  ;;  %v1966_v47 = vcombine.high %v756_v43, %v756_v43  ;;  %v1965_v51 = vcombine.low %v756_v43, %v756_v43  ;;  %v2340_v59 = vld [vmem:[%s2900_s26 + $0x10] ss:$8 sps:$4 sm:$0xff]   ;;  %v2355_v8 = vld [vmem:[%s3025_s10 + $0x14] ss:$8 sps:$4 sm:$0xff]  }
 0x1a2   : >> { %1071 = vmatprep.subr.bf16.mxu0 %v2321_v38  ;;  %v2007_v48 = vcombine.high %v1264_v44, %v1264_v44  ;;  %v2006_v53 = vcombine.low %v1264_v44, %v1264_v44  ;;  %v2345_v61 = vld [vmem:[%s3018_s23 + $0x4] ss:$8 sps:$4 sm:$0xff]   ;;  %v2343_v1 = vld [vmem:[%s3018_s23] ss:$8 sps:$4 sm:$0xff]   ;;  %v2353_v10 = vld [vmem:[%s3025_s10 + $0x10] ss:$8 sps:$4 sm:$0xff]  }
 0x1a3   : >> { %v927_v55 = vsel %vm326_vm0, %v1965_v51, 0  ;;  %v2348_v62 = vld [vmem:[%s2900_s26 + $0x4] ss:$8 sps:$4 sm:$0xff]   ;;  %v2346_v2 = vld [vmem:[%s2900_s26] ss:$8 sps:$4 sm:$0xff]   ;;  %s2606_s26 = smov 18  }
 0x1a4   : >> { %845 = vmatpush1.bf16.msra.mxu1 %v2323_v39  ;;  %v1307_v56 = vsel %vm326_vm0, %v2006_v53, 0  ;;  %v1146_v0 = vld [vmem:[%s3025_s10 + $0x20] sm:$0xff]  ;;  %v2366_v20 = vld [vmem:[%s2962_s27 + $0x14] ss:$8 sps:$4 sm:$0xff]   ;;  %v2364_v21 = vld [vmem:[%s2962_s27 + $0x10] ss:$8 sps:$4 sm:$0xff]  }
 0x1a5   : >> { %1072 = vmatpush1.bf16.msra.mxu0 %v2324_v40  ;;  %846 = vmatprep.subr.bf16.mxu1 %v2325_v41  ;;  %v1996_v3 = vcombine.high %v1146_v0, %v1146_v0  ;;  %v1995_v5 = vcombine.low %v1146_v0, %v1146_v0  ;;  %v2358_v11 = vld [vmem:[%s3025_s10 + $0x4] ss:$8 sps:$4 sm:$0xff]   ;;  %v2356_v15 = vld [vmem:[%s3025_s10] ss:$8 sps:$4 sm:$0xff]   ;;  %v2378_v30 = vld [vmem:[#allocation8 + $0x60] ss:$8 sps:$4 sm:$0xff]  }
 0x1a6   : >> { %1073 = vmatprep.subr.bf16.mxu0 %v2327_v42  ;;  %v2375_v27 = vld [vmem:[#allocation8 + $0x70] ss:$8 sps:$4 sm:$0xff]   ;;  %v2377_v29 = vld [vmem:[#allocation8 + $0x74] ss:$8 sps:$4 sm:$0xff]   ;;  %v2380_v31 = vld [vmem:[#allocation8 + $0x64] ss:$8 sps:$4 sm:$0xff]  }
 0x1a7   : >> { %v1189_v7 = vsel %vm326_vm0, %v1995_v5, 0  ;;  %v2381_v32 = vld [vmem:[#allocation8 + $0x50] ss:$8 sps:$4 sm:$0xff]   ;;  %v2383_v33 = vld [vmem:[#allocation8 + $0x54] ss:$8 sps:$4 sm:$0xff]   ;;  %s2052_s27 = sshll.u32 %s2585_s5, 4 }
 0x1a8   : >> { %847 = vmatpush1.bf16.msra.mxu1 %v2329_v45  ;;  %v2384_v35 = vld [vmem:[#allocation8 + $0x40] ss:$8 sps:$4 sm:$0xff]   ;;  %v2386_v36 = vld [vmem:[#allocation8 + $0x44] ss:$8 sps:$4 sm:$0xff]   ;;  %v2389_v37 = vld [vmem:[#allocation8 + $0x34] ss:$8 sps:$4 sm:$0xff]   ;;  %s1741_s28 = scalar_lea.vmem %s2858_s30, %s2052_s27 [#allocation9] }
 0x1a9   : >> { %1074 = vmatpush1.bf16.msra.mxu0 %v2330_v46  ;;  %1967 = vmatprep.subr.msk.bf16.mxu1 %vm326_vm0, %v1966_v47  ;;  %v2390_v38 = vld [vmem:[#allocation8 + $0x20] ss:$8 sps:$4 sm:$0xff]   ;;  %v2392_v39 = vld [vmem:[#allocation8 + $0x24] ss:$8 sps:$4 sm:$0xff]   ;;  %v2393_v40 = vld [vmem:[#allocation8 + $0x10] ss:$8 sps:$4 sm:$0xff]  }
 0x1aa   : >> { %2008 = vmatprep.subr.msk.bf16.mxu0 %vm326_vm0, %v2007_v48  ;;  %v2395_v41 = vld [vmem:[#allocation8 + $0x14] ss:$8 sps:$4 sm:$0xff]   ;;  %v2396_v42 = vld [vmem:[#allocation8] ss:$8 sps:$4 sm:$0xff]   ;;  %v2398_v43 = vld [vmem:[#allocation8 + $0x4] ss:$8 sps:$4 sm:$0xff]  }
 0x1ab   : >> { %1957 = vmatmul.mubr.msk.bf16.vlgmr.msra.gmra.mxu1 %vm819_vm7, %v2333_v50  ;;  %v2399_v44 = vld [vmem:[#allocation8 + $0xd4] ss:$8 sps:$4 sm:$0x3f]   ;;  %v2401_v45 = vld [vmem:[#allocation8 + $0xd0] ss:$8 sps:$4 sm:$0x3f]  }
 0x1ac   : >> { %1983 = vmatmul.mubr.msk.bf16.vlgmr.msra.gmra.mxu0 %vm819_vm7, %v2335_v52  ;;  %943 = vmatpush1.bf16.msra.mxu1 %v927_v55  ;;  %v1669_v46 = vsel %vm1667_vm8, %v2401_v45, 0  ;;  %v2402_v47 = vld [vmem:[#allocation8 + $0xc0] ss:$8 sps:$4 sm:$0xff]   ;;  %v2404_v48 = vld [vmem:[#allocation8 + $0xc4] ss:$8 sps:$4 sm:$0xff]   ;;  %s552_s5 = sadd.s32 1, %s2585_s5  }
 0x1ad   : >> { %1323 = vmatpush1.bf16.msra.mxu0 %v1307_v56  ;;  %944 = vmatprep.subr.bf16.mxu1 %v2339_v54  ;;  %v2405_v50 = vld [vmem:[#allocation8 + $0xb0] ss:$8 sps:$4 sm:$0xff]   ;;  %v2407_v51 = vld [vmem:[#allocation8 + $0xb4] ss:$8 sps:$4 sm:$0xff]   ;;  %v2408_v52 = vld [vmem:[#allocation8 + $0xa0] ss:$8 sps:$4 sm:$0xff]  }
 0x1ae   : >> { %1324 = vmatprep.subr.bf16.mxu0 %v2342_v57  ;;  %874 = vmatprep.mubr.bf16.mxu1 %v2605_v49  ;;  %v2410_v53 = vld [vmem:[#allocation8 + $0xa4] ss:$8 sps:$4 sm:$0xff]   ;;  %v2411_v54 = vld [vmem:[#allocation8 + $0x90] ss:$8 sps:$4 sm:$0xff]   ;;  %v2413_v55 = vld [vmem:[#allocation8 + $0x94] ss:$8 sps:$4 sm:$0xff]  }
 0x1af   : >> { %1101 = vmatprep.mubr.bf16.mxu0 %v2605_v49  ;;  %v2416_v56 = vld [vmem:[#allocation8 + $0x84] ss:$8 sps:$4 sm:$0xff]   ;;  %v2414_v57 = vld [vmem:[#allocation8 + $0x80] ss:$8 sps:$4 sm:$0xff]   ;;  %p549_p8 = scmp.ge.s32.totalorder %s552_s5, 110  }
 0x1b0   : >> { %945 = vmatpush1.bf16.msra.mxu1 %v2337_v58  ;;  %s2098_s14 = smul.u32 (%p549_p8), 28160, %s2656_s19  ;;  %s1759_s7 = sshll.u32 (%p549_p8), %s2858_s30, 4  ;;  %s3089_s7 = int_to_ptr.vmem [resolvable:$true] %s1759_s7 }
 0x1b1   : >> { %1325 = vmatpush1.bf16.msra.mxu0 %v2340_v59  ;;  %946 = vmatprep.subr.bf16.mxu1 %v2345_v61  ;;  %s1746_s21 = scalar_lea.sflag (%p549_p8), [#allocation5], %s2762_s11  ;;  %s2509_s0 = scalar_lea.vmem (%p549_p8), %s3089_s7, 28160 }
 0x1b2   : >> { %1326 = vmatprep.subr.bf16.mxu0 %v2348_v62  ;;  %s3087_s6 = scalar_lea.hbm (%p549_p8), %s3136_s4, %s2098_s14  ;;  %p2510_p7 = scmp.ne.s32.totalorder (%p549_p8), %s3089_s7, %s2509_s0 }
 0x1b3   : >> { %1958 = vmatmul.mubr.msk.bf16.gmra.mxu1 %vm819_vm7, %v2349_v60  ;;  %p3158_p11 = scmp.ne.s32.totalorder (%p549_p8), %s3148_s25, 0  ;;  %s2607_s20 = smov (%p549_p8), [#allocation9]  }
 0x1b4   : >> { %1984 = vmatmul.mubr.msk.bf16.gmra.mxu0 %vm819_vm7, %v2361_v63  ;;  %947 = vmatpush1.bf16.msra.mxu1 %v2343_v1  ;;  %s2513_s5 = sshll.u32 (%p549_p8), %s2607_s20, 4  ;;  %s2514_s5 = int_to_ptr.vmem [resolvable:$false] %s2513_s5 }
 0x1b5   : >> { %1327 = vmatpush1.bf16.msra.mxu0 %v2346_v2  ;;  %1997 = vmatprep.subr.msk.bf16.mxu1 %vm326_vm0, %v1996_v3  ;;  %p2511_p10 = pnand (%p549_p8), %p2510_p7, %p3158_p11  ;;  %s2515_s19 = scalar_lea.vmem (%p549_p8), %s2514_s5, 56320 }
 0x1b6   : >> { %964 = vmatprep.mubr.bf16.mxu1 %v2605_v49  ;;  %1344 = vmatprep.mubr.bf16.mxu0 %v2605_v49  ;;  %p2516_p2 = scmp.lt.s32.totalorder (%p549_p8), %s3089_s7, %s2514_s5  ;;  %p2517_p6 = scmp.lt.s32.totalorder (%p549_p8), %s2515_s19, %s2509_s0 }
 0x1b7   : >> { %1674 = vmatprep.subr.bf16.mxu0 %v2377_v29  ;;  %p2512_p1 = pneg (%p549_p8), %p2511_p10 }
 0x1b8   : > { %p2518_p12 = por (%p549_p8), %p2517_p6, %p2516_p2 }
 0x1ba   : > { %p2519_p3 = pnand (%p549_p8), %p2518_p12, %p2512_p1 }
 0x1bb   : >> { %1968 = vmatmul.mubr.msk.bf16.vlgmr.msra.gmra.mxu1 %vm819_vm7, %v2351_v4 }
 0x1bc   : >> { %2009 = vmatmul.mubr.msk.bf16.vlgmr.msra.gmra.mxu0 %vm819_vm7, %v2367_v6  ;;  %1205 = vmatpush1.bf16.msra.mxu1 %v1189_v7 }
 0x1bd   : >> { %974 = vmatprep.mubr.bf16.mxu1 %v2605_v49  ;;  %1206 = vmatprep.subr.bf16.mxu1 %v2355_v8 }
 0x1be   : >> { %1354 = vmatprep.mubr.bf16.mxu0 %v2605_v49  ;;  %1675 = vmatpush1.bf16.msra.mxu0 %v2375_v27 }
 0x1bf   : >> { %1676 = vmatprep.subr.bf16.mxu0 %v2380_v31 }
 0x1c0   : >> { %1207 = vmatpush1.bf16.msra.mxu1 %v2353_v10 }
 0x1c1   : >> { %1208 = vmatprep.subr.bf16.mxu1 %v2358_v11 }
 0x1c2   : >> { %1677 = vmatpush1.bf16.msra.mxu0 %v2378_v30 }
 0x1c3   : >> { %1969 = vmatmul.mubr.msk.bf16.gmra.mxu1 %vm819_vm7, %v2359_v12  ;;  %1678 = vmatprep.subr.bf16.mxu0 %v2383_v33 }
 0x1c4   : >> { %2010 = vmatmul.mubr.msk.bf16.gmra.mxu0 %vm819_vm7, %v2372_v13  ;;  %1209 = vmatpush1.bf16.msra.mxu1 %v2356_v15 }
 0x1c5   : >> { %1226 = vmatprep.mubr.bf16.mxu1 %v2605_v49  ;;  %2019 = vmatprep.subr.msk.bf16.mxu1 %vm326_vm0, %v2018_v16 }
 0x1c6   : >> { %1679 = vmatpush1.bf16.msra.mxu0 %v2381_v32 }
 0x1c7   : >> { %1680 = vmatprep.subr.bf16.mxu0 %v2386_v36 }
 0x1ca   : >> { %1681 = vmatpush1.bf16.msra.mxu0 %v2384_v35 }
 0x1cb   : >> { %1998 = vmatmul.mubr.msk.bf16.vlgmr.msra.gmra.mxu1 %vm819_vm7, %v2362_v17  ;;  %1682 = vmatprep.subr.bf16.mxu0 %v2389_v37 }
 0x1cc   : >> { %1441 = vmatpush1.bf16.msra.mxu1 %v1425_v19  ;;  %1236 = vmatprep.mubr.bf16.mxu1 %v2605_v49 }
 0x1cd   : >> { %1442 = vmatprep.subr.bf16.mxu1 %v2366_v20 }
 0x1d0   : >> { %1443 = vmatpush1.bf16.msra.mxu1 %v2364_v21 }
 0x1d1   : >> { %1444 = vmatprep.subr.bf16.mxu1 %v2370_v22 }
 0x1d3   : >> { %1999 = vmatmul.mubr.msk.bf16.gmra.mxu1 %vm819_vm7, %v2371_v23 }
 0x1d4   : >> { %1445 = vmatpush1.bf16.msra.mxu1 %v2368_v24  ;;  %1462 = vmatprep.mubr.bf16.mxu1 %v2605_v49 }
 0x1db   : >> { %2020 = vmatmul.mubr.msk.bf16.vlgmr.msra.gmra.mxu1 %vm819_vm7, %v2373_v25 }
 0x1dc   : >> { %1472 = vmatprep.mubr.bf16.mxu1 %v2605_v49  ;;  %v2387_v49 = vld [vmem:[#allocation8 + $0x30] ss:$8 sps:$4 sm:$0xff]  }
 0x1dd   : >> { %1683 = vmatpush1.bf16.msra.mxu0 %v2387_v49 }
 0x1de   : >> { %1684 = vmatprep.subr.bf16.mxu0 %v2392_v39 }
 0x1e1   : >> { %1685 = vmatpush1.bf16.msra.mxu0 %v2390_v38 }
 0x1e2   : >> { %1686 = vmatprep.subr.bf16.mxu0 %v2395_v41 }
 0x1e3   : >> { %2021 = vmatmul.mubr.msk.bf16.gmra.mxu1 %vm819_vm7, %v2374_v26 }
 0x1e5   : >> { %1687 = vmatpush1.bf16.msra.mxu0 %v2393_v40 }
 0x1e6   : >> { %1688 = vmatprep.subr.bf16.mxu0 %v2398_v43 }
 0x1e9   : >> { %1689 = vmatpush1.bf16.msra.mxu0 %v2396_v42 }
 0x1ea   : >> { %2050 = vmatprep.subr.msk.bf16.mxu0 %vm1667_vm8, %v2399_v44 }
 0x1ed   : >> { %1695 = vmatpush2.bf16.msra.mxu0 %v1669_v46 }
 0x1ee   : >> { %1696 = vmatprep.subr.bf16.mxu0 %v2404_v48 }
 0x1f1   : >> { %1697 = vmatpush2.bf16.msra.mxu0 %v2402_v47 }
 0x1f2   : >> { %1698 = vmatprep.subr.bf16.mxu0 %v2407_v51 }
 0x1f5   : >> { %1699 = vmatpush2.bf16.msra.mxu0 %v2405_v50 }
 0x1f6   : >> { %1700 = vmatprep.subr.bf16.mxu0 %v2410_v53 }
 0x1f9   : >> { %1701 = vmatpush2.bf16.msra.mxu0 %v2408_v52 }
 0x1fa   : >> { %1702 = vmatprep.subr.bf16.mxu0 %v2413_v55 }
 0x1fd   : >> { %1703 = vmatpush2.bf16.msra.mxu0 %v2411_v54 }
 0x1fe   : >> { %1704 = vmatprep.subr.bf16.mxu0 %v2416_v56 }
 0x201   : >> { %1705 = vmatpush2.bf16.msra.mxu0 %v2414_v57 }
 0x26b   : >> { %v866_v58 = vpop.f32.mrf.mxu1 }
 0x26c   : >> { %v1093_v59 = vpop.f32.mrf.mxu0 }
 0x26d   : >> { %v868_v60 = vpop.f32.mrf.mxu1 }
 0x26e   : >> { %v1095_v61 = vpop.f32.mrf.mxu0 }
 0x26f   : >> { %v870_v62 = vpop.f32.mrf.mxu1 }
 0x270   : >> { %v1097_v0 = vpop.f32.mrf.mxu0 }
 0x271   : >> { %v872_v63 = vpop.f32.mrf.mxu1 }
 0x272   : >> { %v1099_v3 = vpop.f32.mrf.mxu0 }
 0x273   : >> { %v876_v1 = vpop.f32.mrf.mxu1 }
 0x274   : >> { %v1103_v6 = vpop.f32.mrf.mxu0 }
 0x275   : >> { %v878_v2 = vpop.f32.mrf.mxu1 }
 0x276   : >> { %v1105_v10 = vpop.f32.mrf.mxu0 }
 0x277   : >> { %v880_v4 = vpop.f32.mrf.mxu1 }
 0x278   : >> { %v1107_v13 = vpop.f32.mrf.mxu0 }
 0x279   : >> { %v882_v5 = vpop.f32.mrf.mxu1 }
 0x27a   : >> { %v1109_v16 = vpop.f32.mrf.mxu0 }
 0x27b   : >> { %v966_v7 = vpop.f32.mrf.mxu1 }
 0x27c   : >> { %v1346_v19 = vpop.f32.mrf.mxu0  ;;  %v967_v43 = vadd.f32 %v966_v7, %v866_v58 }
 0x27d   : >> { %v968_v8 = vpop.f32.mrf.mxu1 }
 0x27e   : >> { %v1348_v22 = vpop.f32.mrf.mxu0  ;;  %v969_v49 = vadd.f32 %v968_v8, %v868_v60  ;;  %v1112_v57 = vadd.f32 %v1093_v59, %v967_v43 }
 0x27f   : >> { %v970_v11 = vpop.f32.mrf.mxu1 }
 0x280   : >> { %v1350_v25 = vpop.f32.mrf.mxu0  ;;  %v971_v37 = vadd.f32 %v970_v11, %v870_v62  ;;  %v1113_v47 = vadd.f32 %v1095_v61, %v969_v49 }
 0x281   : >> { %v972_v12 = vpop.f32.mrf.mxu1 }
 0x282   : >> { %v1352_v27 = vpop.f32.mrf.mxu0  ;;  %v973_v41 = vadd.f32 %v972_v12, %v872_v63  ;;  %v1114_v48 = vadd.f32 %v1097_v0, %v971_v37 }
 0x283   : >> { %v976_v14 = vpop.f32.mrf.mxu1 }
 0x284   : >> { %v1356_v31 = vpop.f32.mrf.mxu0  ;;  %v977_v38 = vadd.f32 %v976_v14, %v876_v1  ;;  %v1115_v53 = vadd.f32 %v1099_v3, %v973_v41 }
 0x285   : >> { %v978_v15 = vpop.f32.mrf.mxu1 }
 0x286   : >> { %v979_v35 = vadd.f32 %v978_v15, %v878_v2  ;;  %v1358_v39 = vpop.f32.mrf.mxu0  ;;  %v1116_v50 = vadd.f32 %v1103_v6, %v977_v38 }
 0x287   : >> { %v980_v17 = vpop.f32.mrf.mxu1 }
 0x288   : >> { %v981_v36 = vadd.f32 %v980_v17, %v880_v4  ;;  %v1117_v45 = vadd.f32 %v1105_v10, %v979_v35  ;;  %v1360_v51 = vpop.f32.mrf.mxu0 }
 0x289   : >> { %v982_v18 = vpop.f32.mrf.mxu1 }
 0x28a   : >> { %v983_v42 = vadd.f32 %v982_v18, %v882_v5  ;;  %v1118_v46 = vadd.f32 %v1107_v13, %v981_v36  ;;  %v1362_v5 = vpop.f32.mrf.mxu0 }
 0x28b   : >> { %v1228_v20 = vpop.f32.mrf.mxu1 }
 0x28c   : >> { %v1119_v54 = vadd.f32 %v1109_v16, %v983_v42  ;;  %v1247_v58 = vadd.f32 %v1228_v20, %v1112_v57 }
 0x28d   : >> { %v1230_v21 = vpop.f32.mrf.mxu1 }
 0x28e   : >> { %v1248_v60 = vadd.f32 %v1230_v21, %v1113_v47  ;;  %v1365_v59 = vadd.f32 %v1346_v19, %v1247_v58 }
 0x28f   : >> { %v1232_v23 = vpop.f32.mrf.mxu1 }
 0x290   : >> { %v1249_v62 = vadd.f32 %v1232_v23, %v1114_v48  ;;  %v1366_v0 = vadd.f32 %v1348_v22, %v1248_v60 }
 0x291   : >> { %v1234_v24 = vpop.f32.mrf.mxu1 }
 0x292   : >> { %v1250_v63 = vadd.f32 %v1234_v24, %v1115_v53  ;;  %v1367_v6 = vadd.f32 %v1350_v25, %v1249_v62 }
 0x293   : >> { %v1238_v26 = vpop.f32.mrf.mxu1 }
 0x294   : >> { %v1251_v1 = vadd.f32 %v1238_v26, %v1116_v50  ;;  %v1368_v3 = vadd.f32 %v1352_v27, %v1250_v63 }
 0x295   : >> { %v1240_v29 = vpop.f32.mrf.mxu1 }
 0x296   : >> { %v1252_v55 = vadd.f32 %v1240_v29, %v1117_v45  ;;  %v1369_v10 = vadd.f32 %v1356_v31, %v1251_v1 }
 0x297   : >> { %v1242_v30 = vpop.f32.mrf.mxu1 }
 0x298   : >> { %v1253_v56 = vadd.f32 %v1242_v30, %v1118_v46  ;;  %v1370_v8 = vadd.f32 %v1358_v39, %v1252_v55 }
 0x299   : >> { %v1244_v32 = vpop.f32.mrf.mxu1 }
 0x29a   : >> { %v1254_v4 = vadd.f32 %v1244_v32, %v1119_v54  ;;  %v1371_v61 = vadd.f32 %v1360_v51, %v1253_v56 }
 0x29b   : >> { %v1464_v33 = vpop.f32.mrf.mxu1 }
 0x29c   : >> { %v1372_v12 = vadd.f32 %v1362_v5, %v1254_v4  ;;  %v1483_v20 = vadd.f32 %v1464_v33, %v1365_v59 }
 0x29d   : >> { %v1466_v40 = vpop.f32.mrf.mxu1 }
 0x29e   : >> { %v1484_v18 = vadd.f32 %v1466_v40, %v1366_v0 }
 0x29f   : >> { %v1468_v44 = vpop.f32.mrf.mxu1 }
 0x2a0   : >> { %v1485_v15 = vadd.f32 %v1468_v44, %v1367_v6 }
 0x2a1   : >> { %v1470_v52 = vpop.f32.mrf.mxu1 }
 0x2a2   : >> { %v1486_v21 = vadd.f32 %v1470_v52, %v1368_v3 }
 0x2a3   : >> { %v1474_v2 = vpop.f32.mrf.mxu1 }
 0x2a4   : >> { %v1487_v16 = vadd.f32 %v1474_v2, %v1369_v10 }
 0x2a5   : >> { %v1476_v7 = vpop.f32.mrf.mxu1 }
 0x2a6   : >> { %v1488_v13 = vadd.f32 %v1476_v7, %v1370_v8  ;;  %v1491_v30 = vmax.f32 %v1483_v20, %v1487_v16 }
 0x2a7   : >> { %v1478_v11 = vpop.f32.mrf.mxu1 }
 0x2a8   : >> { %v1489_v14 = vadd.f32 %v1478_v11, %v1371_v61  ;;  %v1492_v26 = vmax.f32 %v1484_v18, %v1488_v13 }
 0x2a9   : >> { %v1480_v17 = vpop.f32.mrf.mxu1 }
 0x2aa   : >> { %v1490_v23 = vadd.f32 %v1480_v17, %v1372_v12  ;;  %v1493_v24 = vmax.f32 %v1485_v15, %v1489_v14 }
 0x2ac   : >> { %v1494_v29 = vmax.f32 %v1486_v21, %v1490_v23  ;;  %v1495_v25 = vpack.c.bf16 %v1493_v24, %v1491_v30 }
 0x2ae   : >> { %v1496_v22 = vpack.c.bf16 %v1494_v29, %v1492_v26 }
 0x2b0   : >> { %2051 = vmatprep.mubr.msk.bf16.mxu0 %vm1663_vm9, %v1496_v22 }
 0x2b1   : >> { %1707 = vmatmul.mubr.bf16.vlgmr.msra.gmra.mxu0 %v1495_v25 }
 0x371   : >> { %v1708_v27 = vpop.f32.mrf.mxu0 }
 0x372   : >> { %1721 = vrot.lane.b32.xlu0 %v1708_v27, %s2606_s26 }
 0x373   : >> { %v1710_v19 = vpop.f32.mrf.mxu0 }
 0x374   : >> { %1723 = vrot.lane.b32.xlu1 %v1710_v19, %s2606_s26 }
 0x375   : >> { %v1712_v31 = vpop.f32.mrf.mxu0 }
 0x376   : >> { %1725 = vrot.lane.b32.xlu0 %v1712_v31, %s2606_s26 }
 0x377   : >> { %v1714_v32 = vpop.f32.mrf.mxu0 }
 0x378   : >> { %1727 = vrot.lane.b32.xlu1 %v1714_v32, %s2606_s26 }
 0x3e4   : >> { %v1722_v33 = vpop.permute.xlu0 %1721 }
 0x3e6   : >> { %v1724_v35 = vpop.permute.xlu1 %1723 }
 0x3e7   : >> { %v1730_v36 = vsel %vm1729_vm10, %v1722_v33, %v1724_v35 }
 0x3e8   : >> { %v1734_v49 = vmax.f32 %v1708_v27, %v1730_v36  ;;  %v1726_v38 = vpop.permute.xlu0 %1725 }
 0x3ea   : >> { %v1736_v37 = vadd.f32 %v1734_v49, %v2807_v28  ;;  %v1728_v39 = vpop.permute.xlu1 %1727 }
 0x3eb   : >> { %v1731_v40 = vsel %vm1729_vm10, %v1726_v38, %v1728_v39 }
 0x3ec   : >> { %v1738_v41 = vmax.f32 %v1736_v37, 0.0  ;;  %v1735_v42 = vmax.f32 %v1712_v31, %v1731_v40 }
 0x3ee   : >> { %1743 = vst.msk [vmem:[%s1741_s28] sm:$0xff] %vm1742_vm11, %v1738_v41  ;;  %v1737_v43 = vadd.f32 %v1735_v42, %v2812_v34  ;;  %551 = sbr.rel (!%p549_p8) target bundleno = 258 (0x102), region = 116 }
 0x3f0   : >> { %v1739_v44 = vmax.f32 %v1737_v43, 0.0 }
 0x3f2   : >> { %1744 = vst.msk [vmem:[%s1741_s28 + $0x8] sm:$0xff] %vm1742_vm11, %v1739_v44 }
 0x3f3   : > { %2522 = shalt.err (!%p2519_p3)
}
 0x3f4   : > { %s2523_s30 = scalar_lea.hbm %s3087_s6, 28160  ;;  %s2527_s23 = scalar_lea.hbm %s3136_s4, 56320 }
 0x3f5   : > { %p2524_p9 = scmp.ne.s32.totalorder %s3087_s6, %s2523_s30  ;;  %p2528_p0 = scmp.lt.s32.totalorder %s3087_s6, %s3136_s4 }
 0x3f6   : > { %p2529_p4 = scmp.lt.s32.totalorder %s2527_s23, %s2523_s30 }
 0x3f7   : > { %p2525_p13 = pnand %p2524_p9, %p3158_p11 }
 0x3f8   : > { %p2530_p8 = por %p2529_p4, %p2528_p0 }
 0x3f9   : > { %p2526_p5 = pneg %p2525_p13 }
 0x3fb   : > { %p2531_p7 = pnand %p2530_p8, %p2526_p5 }
 0x3fd   : > { %2534 = shalt.err (!%p2531_p7)
}
 0x3fe   : > { %s2608_s27 = smov 128   ;;  %s2609_s28 = smov 8  }
 0x3ff   : > { %2109 = dma.vmem_to_hbm [thread:$0]  (%p3158_p11), %s3089_s7, 28160, %s3087_s6, %s1746_s21, %s2608_s27, %s2608_s27, %s2609_s28  }
 0x400 PF: > { %s1774_s14 = sand.u32 1, %s2569_s15   ;;  %p3159_p10 = scmp.ne.s32.totalorder %s3144_s22, 0 }
 0x401   : > { %p3160_p1 = scmp.ge.s32.totalorder %s2581_s18, 2  ;;  %s1775_s12 = scalar_lea.sflag [#allocation5], %s1774_s14 }
 0x403   : > { %p2123_p2 = pnand %p3160_p1, %p3159_p10 }
 0x405   : > { %p2124_p6 = pneg %p2123_p2 }
 0x407   : > { %2564 = dma.done.wait (%p2124_p6), %s1775_s12, 28160  }
 0x408   : > { %2566 = vsyncadd (%p2124_p6), %s1775_s12, 4294939136  ;;  %p18_p12 = scmp.ge.s32.totalorder %s2707_s13, 4   ;;  %s3161_s15 = smov %s2573_s16 }
 0x409   : > { %s3162_s16 = smov %s2577_s17  ;;  %s3163_s17 = smov %s2716_s24 }
 0x40a   : > { %s3164_s18 = smov %s2707_s13  ;;  %20 = sbr.rel (!%p18_p12) target bundleno = 8 (0x8), region = 127 }
 0x40f   :  { %1780 = vsyncpa [#allocation4], 1 }
 0x410   :  { %1782 = vsyncpa [#allocation4 + $0x1], 1 }
 0x411   :  { %1783 = vsyncpa [#allocation7], 1 }
 0x412   :  { %1784 = vsyncpa [#allocation5], 1 }
 0x413   :  { %1786 = vsyncpa [#allocation5 + $0x1], 1 }

</bundles_post_ra>
